<compile_context>
chip_gen: v7x
topology: tpu7x:2x2x1
jax: 0.10.0
libtpu: 0.0.40
codegen_flags: <defaults>
</compile_context>

<pallas_src>
import functools

import jax
import jax.numpy as jnp
from jax import lax
from jax.experimental import pallas as pl
from jax.experimental.pallas import tpu as pltpu


def _mha_kernel(xq_ref, xk_ref, xv_ref,
                wq_ref, bq_ref, wk_ref, bk_ref, wv_ref, bv_ref,
                wo_ref, bo_ref,
                o_ref,
                k_scr, v_scr,
                *, num_heads: int, head_dim: int):
    """One (batch element, query tile) per grid step.

    Refs:
      xq_ref: (1, TQ, E) bf16     xk_ref/xv_ref: (1, S, E) bf16
      wq/wk/wv/wo_ref: (E, E) bf16  (pre-transposed; 1/sqrt(D) folded into wq)
      bq/bk/bv/bo_ref: (1, E) f32   (1/sqrt(D) folded into bq)
      o_ref: (1, TQ, E) out dtype
      k_scr/v_scr: (S, E) bf16 VMEM scratch — projected K/V, resident per batch.
    """
    H, D = num_heads, head_dim

    # --- K/V projection: once per batch element (query-tile index == 0) ------
    @pl.when(pl.program_id(1) == 0)
    def _():
        k = jnp.dot(xk_ref[0], wk_ref[...],
                    preferred_element_type=jnp.float32) + bk_ref[...]
        v = jnp.dot(xv_ref[0], wv_ref[...],
                    preferred_element_type=jnp.float32) + bv_ref[...]
        k_scr[...] = k.astype(k_scr.dtype)
        v_scr[...] = v.astype(v_scr.dtype)

    xq = xq_ref[0]                    # (TQ, E) bf16
    tq, e = xq.shape

    # --- Q projection: single lane-dense matmul; scale already folded in -----
    q = jnp.dot(xq, wq_ref[...],
                preferred_element_type=jnp.float32) + bq_ref[...]
    qb = q.astype(jnp.bfloat16)       # (TQ, E)

    # --- per-head attention + accumulated output projection ------------------
    # Heads are split with static lane slices; every matmul stays 2-D, and the
    # output projection accumulates into a single (TQ, E) f32 buffer.
    acc = jnp.zeros((tq, e), jnp.float32)
    for h in range(H):
        lo, hi = h * D, (h + 1) * D
        qh = qb[:, lo:hi]             # (TQ, D) bf16
        kh = k_scr[:, lo:hi]          # (S,  D) bf16
        vh = v_scr[:, lo:hi]          # (S,  D) bf16

        # scores: q @ k.T via dot_general (contract last dims of both).
        energy = lax.dot_general(qh, kh, (((1,), (1,)), ((), ())),
                                 preferred_element_type=jnp.float32)  # (TQ, S)

        # numerically-stable softmax with deferred normalization.
        m = jnp.max(energy, axis=-1, keepdims=True)
        p = jnp.exp(energy - m)                                        # (TQ, S)
        l = jnp.sum(p, axis=-1, keepdims=True)                         # (TQ, 1)
        # TODO(synk): nn.Dropout on attention weights is identity in eval mode,
        # and the optional `mask` argument (default None) is not implemented.

        ctx = jnp.dot(p.astype(jnp.bfloat16), vh,
                      preferred_element_type=jnp.float32)              # (TQ, D)
        ctx = ctx * pl.reciprocal(l, approx=True)                      # deferred norm

        # output projection, accumulated per head: (TQ,D) @ (D,E) -> (TQ,E)
        acc = acc + jnp.dot(ctx.astype(jnp.bfloat16), wo_ref[lo:hi, :],
                            preferred_element_type=jnp.float32)

    out = acc + bo_ref[...]
    o_ref[0] = out.astype(o_ref.dtype)


def multi_head_attention(query, key, value, params, *, num_heads: int,
                         q_tile=None):
    """query/key/value: (B, S, E). params: PyTorch-layout weights (W:(out,in), b:(out,))."""
    B, S, E = query.shape
    D = E // num_heads
    assert D * num_heads == E, "embed_dim must be divisible by num_heads"
    out_dtype = query.dtype

    # Query-tile size: prefer large 128-aligned tiles (amortize per-step
    # overhead, long MXU runs); fall back to the full sequence.
    if q_tile is None:
        q_tile = next((c for c in (512, 256, 128) if S % c == 0), S)
    assert S % q_tile == 0
    n_q = S // q_tile

    compute_dtype = jnp.bfloat16
    inv_scale = 1.0 / (float(D) ** 0.5)

    # ---- host-side weight prep (all transposes / scaling hoisted) -----------
    # PyTorch Linear computes y = x @ W.T + b, W is (out, in): pre-transpose so
    # the kernel does a plain x @ W matmul. Fold 1/sqrt(D) into the Q weights.
    wq = (params["wq"].T * inv_scale).astype(compute_dtype)   # (E, E)
    wk = params["wk"].T.astype(compute_dtype)                 # (E, E)
    wv = params["wv"].T.astype(compute_dtype)                 # (E, E)
    wo = params["wo"].T.astype(compute_dtype)                 # (H*D, E)
    bq = (params["bq"] * inv_scale).reshape(1, E).astype(jnp.float32)
    bk = params["bk"].reshape(1, E).astype(jnp.float32)
    bv = params["bv"].reshape(1, E).astype(jnp.float32)
    bo = params["bo"].reshape(1, E).astype(jnp.float32)

    # bf16 activations into the kernel (halves DMA bytes; f32 accumulation inside).
    q_in = query.astype(compute_dtype)
    k_in = key.astype(compute_dtype)
    v_in = value.astype(compute_dtype)

    kernel = functools.partial(_mha_kernel, num_heads=num_heads, head_dim=D)

    q_spec = pl.BlockSpec((1, q_tile, E), lambda b, i: (b, i, 0))
    kv_spec = pl.BlockSpec((1, S, E), lambda b, i: (b, 0, 0))
    w_spec = pl.BlockSpec((E, E), lambda b, i: (0, 0))
    b_spec = pl.BlockSpec((1, E), lambda b, i: (0, 0))
    o_spec = pl.BlockSpec((1, q_tile, E), lambda b, i: (b, i, 0))

    return pl.pallas_call(
        kernel,
        out_shape=jax.ShapeDtypeStruct((B, S, E), out_dtype),
        grid_spec=pltpu.PrefetchScalarGridSpec(
            num_scalar_prefetch=0,
            grid=(B, n_q),
            in_specs=[q_spec, kv_spec, kv_spec,
                      w_spec, b_spec, w_spec, b_spec, w_spec, b_spec,
                      w_spec, b_spec],
            out_specs=o_spec,
            scratch_shapes=[pltpu.VMEM((S, E), compute_dtype),   # projected K
                            pltpu.VMEM((S, E), compute_dtype)],  # projected V
        ),
        compiler_params=pltpu.CompilerParams(
            # Batch shards across cores; the q-tile axis must run sequentially
            # on one core so the K/V scratch initialized at i==0 stays valid.
            dimension_semantics=("parallel", "arbitrary"),
            vmem_limit_bytes=64 * 1024 * 1024,
        ),
    )(q_in, k_in, v_in, wq, bq, wk, bk, wv, bv, wo, bo)


def init_params(key, embed_dim):
    """Deterministic parameter init; PyTorch Linear layout: W (out,in), b (out,)."""
    ks = jax.random.split(key, 8)
    bound = 1.0 / (embed_dim ** 0.5)

    def lin(kw, kb):
        w = jax.random.uniform(kw, (embed_dim, embed_dim), jnp.float32, -bound, bound)
        b = jax.random.uniform(kb, (embed_dim,), jnp.float32, -bound, bound)
        return w, b

    wq, bq = lin(ks[0], ks[1])
    wk, bk = lin(ks[2], ks[3])
    wv, bv = lin(ks[4], ks[5])
    wo, bo = lin(ks[6], ks[7])
    return dict(wq=wq, bq=bq, wk=wk, bk=bk, wv=wv, bv=bv, wo=wo, bo=bo)


def _reference(query, key, value, params, num_heads):
    """Pure-JAX f32 reference mirroring the PyTorch forward (eval mode)."""
    B, S, E = query.shape
    D = E // num_heads

    def lin(x, w, b):
        return x @ w.T + b

    def split(x):  # (B,S,E) -> (B,H,S,D)
        return x.reshape(B, S, num_heads, D).transpose(0, 2, 1, 3)

    Q = split(lin(query, params["wq"], params["bq"]))
    K = split(lin(key, params["wk"], params["bk"]))
    V = split(lin(value, params["wv"], params["bv"]))
    energy = jnp.einsum("bhqd,bhkd->bhqk", Q, K) / jnp.sqrt(jnp.float32(D))
    attn = jax.nn.softmax(energy, axis=-1)
    x = jnp.einsum("bhqk,bhkd->bhqd", attn, V)
    x = x.transpose(0, 2, 1, 3).reshape(B, S, E)
    return lin(x, params["wo"], params["bo"])


if __name__ == "__main__":
    B, S, E, H = 2, 8, 32, 4

    root = jax.random.PRNGKey(0)
    k_p, k_q, k_k, k_v = jax.random.split(root, 4)
    params = init_params(k_p, E)

    query = jax.random.normal(k_q, (B, S, E), jnp.float32)
    key = jax.random.normal(k_k, (B, S, E), jnp.float32)
    value = jax.random.normal(k_v, (B, S, E), jnp.float32)

    out = multi_head_attention(query, key, value, params, num_heads=H)
    out = jax.block_until_ready(out)

    ref = _reference(query, key, value, params, H)
    assert out.shape == (B, S, E)
    # bf16 MXU inputs + approx reciprocal -> loosened tolerance vs. f32 reference.
    assert jnp.allclose(out, ref, atol=5e-2, rtol=5e-2), "mismatch vs reference"

    print("KERNEL_OK")
</pallas_src>

<mosaic_0001>
module attributes {stable_mosaic.version = 11 : i64} {
  func.func @_mha_kernel(%arg0: i32, %arg1: i32, %arg2: memref<1x8x32xbf16, #tpu.memory_space<vmem>>, %arg3: memref<1x8x32xbf16, #tpu.memory_space<vmem>>, %arg4: memref<1x8x32xbf16, #tpu.memory_space<vmem>>, %arg5: memref<32x32xbf16, #tpu.memory_space<vmem>>, %arg6: memref<1x32xf32, #tpu.memory_space<vmem>>, %arg7: memref<32x32xbf16, #tpu.memory_space<vmem>>, %arg8: memref<1x32xf32, #tpu.memory_space<vmem>>, %arg9: memref<32x32xbf16, #tpu.memory_space<vmem>>, %arg10: memref<1x32xf32, #tpu.memory_space<vmem>>, %arg11: memref<32x32xbf16, #tpu.memory_space<vmem>>, %arg12: memref<1x32xf32, #tpu.memory_space<vmem>>, %arg13: memref<1x8x32xf32, #tpu.memory_space<vmem>>, %arg14: memref<8x32xbf16, #tpu.memory_space<vmem>>, %arg15: memref<8x32xbf16, #tpu.memory_space<vmem>>) attributes {dimension_semantics = [#tpu.dimension_semantics<parallel>, #tpu.dimension_semantics<arbitrary>], iteration_bounds = array<i64: 2, 1>, scalar_prefetch = 0 : i64, scratch_operands = 2 : i64, tpu.core_type = #tpu.core_type<tc>, window_params = [{transform_indices = @transform_0, window_bounds = array<i64: 1, 8, 32>}, {transform_indices = @transform_1, window_bounds = array<i64: 1, 8, 32>}, {transform_indices = @transform_2, window_bounds = array<i64: 1, 8, 32>}, {pipeline_mode = #tpu.pipeline_mode<synchronous>, transform_indices = @transform_3, window_bounds = array<i64: 32, 32>}, {pipeline_mode = #tpu.pipeline_mode<synchronous>, transform_indices = @transform_4, window_bounds = array<i64: 1, 32>}, {pipeline_mode = #tpu.pipeline_mode<synchronous>, transform_indices = @transform_5, window_bounds = array<i64: 32, 32>}, {pipeline_mode = #tpu.pipeline_mode<synchronous>, transform_indices = @transform_6, window_bounds = array<i64: 1, 32>}, {pipeline_mode = #tpu.pipeline_mode<synchronous>, transform_indices = @transform_7, window_bounds = array<i64: 32, 32>}, {pipeline_mode = #tpu.pipeline_mode<synchronous>, transform_indices = @transform_8, window_bounds = array<i64: 1, 32>}, {pipeline_mode = #tpu.pipeline_mode<synchronous>, transform_indices = @transform_9, window_bounds = array<i64: 32, 32>}, {pipeline_mode = #tpu.pipeline_mode<synchronous>, transform_indices = @transform_10, window_bounds = array<i64: 1, 32>}, {transform_indices = @transform_11, window_bounds = array<i64: 1, 8, 32>}]} {
    %c0_i32 = arith.constant 0 : i32
    %0 = arith.cmpi eq, %arg1, %c0_i32 : i32
    %1 = arith.extui %0 : i1 to i32
    %c0_i32_0 = arith.constant 0 : i32
    %2 = arith.cmpi ne, %1, %c0_i32_0 : i32
    scf.if %2 {
      %c0_54 = arith.constant 0 : index
      %c0_55 = arith.constant 0 : index
      %c0_56 = arith.constant 0 : index
      %98 = vector.load %arg3[%c0_54, %c0_55, %c0_56] : memref<1x8x32xbf16, #tpu.memory_space<vmem>>, vector<1x8x32xbf16>
      %99 = vector.shape_cast %98 : vector<1x8x32xbf16> to vector<8x32xbf16>
      %c0_57 = arith.constant 0 : index
      %c0_58 = arith.constant 0 : index
      %100 = vector.load %arg7[%c0_57, %c0_58] : memref<32x32xbf16, #tpu.memory_space<vmem>>, vector<32x32xbf16>
      %cst_59 = arith.constant dense<0.000000e+00> : vector<8x32xf32>
      %101 = tpu.matmul %99, %100, %cst_59 {dimension_numbers = #tpu.dot_dimension_numbers<[1], [0], [0], [1], [0, 0, 1, 1], [], []>} : vector<8x32xbf16>, vector<32x32xbf16>, vector<8x32xf32> -> vector<8x32xf32>
      %c0_60 = arith.constant 0 : index
      %c0_61 = arith.constant 0 : index
      %102 = vector.load %arg8[%c0_60, %c0_61] : memref<1x32xf32, #tpu.memory_space<vmem>>, vector<1x32xf32>
      %103 = vector.broadcast %102 : vector<1x32xf32> to vector<8x32xf32>
      %104 = arith.addf %101, %103 : vector<8x32xf32>
      %c0_62 = arith.constant 0 : index
      %c0_63 = arith.constant 0 : index
      %c0_64 = arith.constant 0 : index
      %105 = vector.load %arg4[%c0_62, %c0_63, %c0_64] : memref<1x8x32xbf16, #tpu.memory_space<vmem>>, vector<1x8x32xbf16>
      %106 = vector.shape_cast %105 : vector<1x8x32xbf16> to vector<8x32xbf16>
      %c0_65 = arith.constant 0 : index
      %c0_66 = arith.constant 0 : index
      %107 = vector.load %arg9[%c0_65, %c0_66] : memref<32x32xbf16, #tpu.memory_space<vmem>>, vector<32x32xbf16>
      %cst_67 = arith.constant dense<0.000000e+00> : vector<8x32xf32>
      %108 = tpu.matmul %106, %107, %cst_67 {dimension_numbers = #tpu.dot_dimension_numbers<[1], [0], [0], [1], [0, 0, 1, 1], [], []>} : vector<8x32xbf16>, vector<32x32xbf16>, vector<8x32xf32> -> vector<8x32xf32>
      %c0_68 = arith.constant 0 : index
      %c0_69 = arith.constant 0 : index
      %109 = vector.load %arg10[%c0_68, %c0_69] : memref<1x32xf32, #tpu.memory_space<vmem>>, vector<1x32xf32>
      %110 = vector.broadcast %109 : vector<1x32xf32> to vector<8x32xf32>
      %111 = arith.addf %108, %110 : vector<8x32xf32>
      %112 = arith.truncf %104 : vector<8x32xf32> to vector<8x32xbf16>
      %c0_70 = arith.constant 0 : index
      %c0_71 = arith.constant 0 : index
      %113 = vector.load %arg14[%c0_70, %c0_71] : memref<8x32xbf16, #tpu.memory_space<vmem>>, vector<8x32xbf16>
      tpu.vector_store %arg14[%c0_70, %c0_71], %112 {strides = array<i32>} : memref<8x32xbf16, #tpu.memory_space<vmem>>, vector<8x32xbf16>,
      %114 = arith.truncf %111 : vector<8x32xf32> to vector<8x32xbf16>
      %c0_72 = arith.constant 0 : index
      %c0_73 = arith.constant 0 : index
      %115 = vector.load %arg15[%c0_72, %c0_73] : memref<8x32xbf16, #tpu.memory_space<vmem>>, vector<8x32xbf16>
      tpu.vector_store %arg15[%c0_72, %c0_73], %114 {strides = array<i32>} : memref<8x32xbf16, #tpu.memory_space<vmem>>, vector<8x32xbf16>,
    } else {
    }
    %c0 = arith.constant 0 : index
    %c0_1 = arith.constant 0 : index
    %c0_2 = arith.constant 0 : index
    %3 = vector.load %arg2[%c0, %c0_1, %c0_2] : memref<1x8x32xbf16, #tpu.memory_space<vmem>>, vector<1x8x32xbf16>
    %4 = vector.shape_cast %3 : vector<1x8x32xbf16> to vector<8x32xbf16>
    %c0_3 = arith.constant 0 : index
    %c0_4 = arith.constant 0 : index
    %5 = vector.load %arg5[%c0_3, %c0_4] : memref<32x32xbf16, #tpu.memory_space<vmem>>, vector<32x32xbf16>
    %cst = arith.constant dense<0.000000e+00> : vector<8x32xf32>
    %6 = tpu.matmul %4, %5, %cst {dimension_numbers = #tpu.dot_dimension_numbers<[1], [0], [0], [1], [0, 0, 1, 1], [], []>} : vector<8x32xbf16>, vector<32x32xbf16>, vector<8x32xf32> -> vector<8x32xf32>
    %c0_5 = arith.constant 0 : index
    %c0_6 = arith.constant 0 : index
    %7 = vector.load %arg6[%c0_5, %c0_6] : memref<1x32xf32, #tpu.memory_space<vmem>>, vector<1x32xf32>
    %8 = vector.broadcast %7 : vector<1x32xf32> to vector<8x32xf32>
    %9 = arith.addf %6, %8 : vector<8x32xf32>
    %10 = arith.truncf %9 : vector<8x32xf32> to vector<8x32xbf16>
    %cst_7 = arith.constant 0.000000e+00 : f32
    %11 = vector.broadcast %cst_7 : f32 to vector<8x32xf32>
    %12 = vector.extract_strided_slice %10 {offsets = [0, 0], sizes = [8, 8], strides = [1, 1]} : vector<8x32xbf16> to vector<8x8xbf16>
    %c0_8 = arith.constant 0 : index
    %c0_9 = arith.constant 0 : index
    %13 = vector.load %arg14[%c0_8, %c0_9] : memref<8x32xbf16, #tpu.memory_space<vmem>>, vector<8x8xbf16>
    %c0_10 = arith.constant 0 : index
    %c0_11 = arith.constant 0 : index
    %14 = vector.load %arg15[%c0_10, %c0_11] : memref<8x32xbf16, #tpu.memory_space<vmem>>, vector<8x8xbf16>
    %cst_12 = arith.constant dense<0.000000e+00> : vector<8x8xf32>
    %15 = tpu.matmul %12, %13, %cst_12 {dimension_numbers = #tpu.dot_dimension_numbers<[1], [1], [0], [0], [0, 0, 1, 0], [], []>} : vector<8x8xbf16>, vector<8x8xbf16>, vector<8x8xf32> -> vector<8x8xf32>
    %cst_13 = arith.constant dense<0xFF800000> : vector<8xf32>
    %16 = vector.multi_reduction <maximumf>, %15, %cst_13 [1] : vector<8x8xf32> to vector<8xf32>
    %17 = vector.shape_cast %16 : vector<8xf32> to vector<8x1xf32>
    %18 = vector.broadcast %17 : vector<8x1xf32> to vector<8x8xf32>
    %19 = arith.subf %15, %18 : vector<8x8xf32>
    %20 = math.exp %19 : vector<8x8xf32>
    %cst_14 = arith.constant dense<0.000000e+00> : vector<8xf32>
    %21 = vector.multi_reduction <add>, %20, %cst_14 [1] : vector<8x8xf32> to vector<8xf32>
    %22 = vector.shape_cast %21 : vector<8xf32> to vector<8x1xf32>
    %23 = arith.truncf %20 : vector<8x8xf32> to vector<8x8xbf16>
    %cst_15 = arith.constant dense<0.000000e+00> : vector<8x8xf32>
    %24 = tpu.matmul %23, %14, %cst_15 {dimension_numbers = #tpu.dot_dimension_numbers<[1], [0], [0], [1], [0, 0, 1, 1], [], []>} : vector<8x8xbf16>, vector<8x8xbf16>, vector<8x8xf32> -> vector<8x8xf32>
    %25 = tpu.reciprocal %22 {approx = true} : vector<8x1xf32> -> vector<8x1xf32>
    %26 = vector.broadcast %25 : vector<8x1xf32> to vector<8x8xf32>
    %27 = arith.mulf %24, %26 : vector<8x8xf32>
    %28 = arith.truncf %27 : vector<8x8xf32> to vector<8x8xbf16>
    %c0_16 = arith.constant 0 : index
    %c0_17 = arith.constant 0 : index
    %29 = vector.load %arg11[%c0_16, %c0_17] : memref<32x32xbf16, #tpu.memory_space<vmem>>, vector<8x32xbf16>
    %cst_18 = arith.constant dense<0.000000e+00> : vector<8x32xf32>
    %30 = tpu.matmul %28, %29, %cst_18 {dimension_numbers = #tpu.dot_dimension_numbers<[1], [0], [0], [1], [0, 0, 1, 1], [], []>} : vector<8x8xbf16>, vector<8x32xbf16>, vector<8x32xf32> -> vector<8x32xf32>
    %31 = arith.addf %11, %30 : vector<8x32xf32>
    %32 = vector.extract_strided_slice %10 {offsets = [0, 8], sizes = [8, 8], strides = [1, 1]} : vector<8x32xbf16> to vector<8x8xbf16>
    %c0_19 = arith.constant 0 : index
    %c8 = arith.constant 8 : index
    %33 = vector.load %arg14[%c0_19, %c8] : memref<8x32xbf16, #tpu.memory_space<vmem>>, vector<8x8xbf16>
    %c0_20 = arith.constant 0 : index
    %c8_21 = arith.constant 8 : index
    %34 = vector.load %arg15[%c0_20, %c8_21] : memref<8x32xbf16, #tpu.memory_space<vmem>>, vector<8x8xbf16>
    %cst_22 = arith.constant dense<0.000000e+00> : vector<8x8xf32>
    %35 = tpu.matmul %32, %33, %cst_22 {dimension_numbers = #tpu.dot_dimension_numbers<[1], [1], [0], [0], [0, 0, 1, 0], [], []>} : vector<8x8xbf16>, vector<8x8xbf16>, vector<8x8xf32> -> vector<8x8xf32>
    %cst_23 = arith.constant dense<0xFF800000> : vector<8xf32>
    %36 = vector.multi_reduction <maximumf>, %35, %cst_23 [1] : vector<8x8xf32> to vector<8xf32>
    %37 = vector.shape_cast %36 : vector<8xf32> to vector<8x1xf32>
    %38 = vector.broadcast %37 : vector<8x1xf32> to vector<8x8xf32>
    %39 = arith.subf %35, %38 : vector<8x8xf32>
    %40 = math.exp %39 : vector<8x8xf32>
    %cst_24 = arith.constant dense<0.000000e+00> : vector<8xf32>
    %41 = vector.multi_reduction <add>, %40, %cst_24 [1] : vector<8x8xf32> to vector<8xf32>
    %42 = vector.shape_cast %41 : vector<8xf32> to vector<8x1xf32>
    %43 = arith.truncf %40 : vector<8x8xf32> to vector<8x8xbf16>
    %cst_25 = arith.constant dense<0.000000e+00> : vector<8x8xf32>
    %44 = tpu.matmul %43, %34, %cst_25 {dimension_numbers = #tpu.dot_dimension_numbers<[1], [0], [0], [1], [0, 0, 1, 1], [], []>} : vector<8x8xbf16>, vector<8x8xbf16>, vector<8x8xf32> -> vector<8x8xf32>
    %45 = tpu.reciprocal %42 {approx = true} : vector<8x1xf32> -> vector<8x1xf32>
    %46 = vector.broadcast %45 : vector<8x1xf32> to vector<8x8xf32>
    %47 = arith.mulf %44, %46 : vector<8x8xf32>
    %48 = arith.truncf %47 : vector<8x8xf32> to vector<8x8xbf16>
    %c8_26 = arith.constant 8 : index
    %c0_27 = arith.constant 0 : index
    %49 = vector.load %arg11[%c8_26, %c0_27] : memref<32x32xbf16, #tpu.memory_space<vmem>>, vector<8x32xbf16>
    %cst_28 = arith.constant dense<0.000000e+00> : vector<8x32xf32>
    %50 = tpu.matmul %48, %49, %cst_28 {dimension_numbers = #tpu.dot_dimension_numbers<[1], [0], [0], [1], [0, 0, 1, 1], [], []>} : vector<8x8xbf16>, vector<8x32xbf16>, vector<8x32xf32> -> vector<8x32xf32>
    %51 = arith.addf %31, %50 : vector<8x32xf32>
    %52 = vector.extract_strided_slice %10 {offsets = [0, 16], sizes = [8, 8], strides = [1, 1]} : vector<8x32xbf16> to vector<8x8xbf16>
    %c0_29 = arith.constant 0 : index
    %c16 = arith.constant 16 : index
    %53 = vector.load %arg14[%c0_29, %c16] : memref<8x32xbf16, #tpu.memory_space<vmem>>, vector<8x8xbf16>
    %c0_30 = arith.constant 0 : index
    %c16_31 = arith.constant 16 : index
    %54 = vector.load %arg15[%c0_30, %c16_31] : memref<8x32xbf16, #tpu.memory_space<vmem>>, vector<8x8xbf16>
    %cst_32 = arith.constant dense<0.000000e+00> : vector<8x8xf32>
    %55 = tpu.matmul %52, %53, %cst_32 {dimension_numbers = #tpu.dot_dimension_numbers<[1], [1], [0], [0], [0, 0, 1, 0], [], []>} : vector<8x8xbf16>, vector<8x8xbf16>, vector<8x8xf32> -> vector<8x8xf32>
    %cst_33 = arith.constant dense<0xFF800000> : vector<8xf32>
    %56 = vector.multi_reduction <maximumf>, %55, %cst_33 [1] : vector<8x8xf32> to vector<8xf32>
    %57 = vector.shape_cast %56 : vector<8xf32> to vector<8x1xf32>
    %58 = vector.broadcast %57 : vector<8x1xf32> to vector<8x8xf32>
    %59 = arith.subf %55, %58 : vector<8x8xf32>
    %60 = math.exp %59 : vector<8x8xf32>
    %cst_34 = arith.constant dense<0.000000e+00> : vector<8xf32>
    %61 = vector.multi_reduction <add>, %60, %cst_34 [1] : vector<8x8xf32> to vector<8xf32>
    %62 = vector.shape_cast %61 : vector<8xf32> to vector<8x1xf32>
    %63 = arith.truncf %60 : vector<8x8xf32> to vector<8x8xbf16>
    %cst_35 = arith.constant dense<0.000000e+00> : vector<8x8xf32>
    %64 = tpu.matmul %63, %54, %cst_35 {dimension_numbers = #tpu.dot_dimension_numbers<[1], [0], [0], [1], [0, 0, 1, 1], [], []>} : vector<8x8xbf16>, vector<8x8xbf16>, vector<8x8xf32> -> vector<8x8xf32>
    %65 = tpu.reciprocal %62 {approx = true} : vector<8x1xf32> -> vector<8x1xf32>
    %66 = vector.broadcast %65 : vector<8x1xf32> to vector<8x8xf32>
    %67 = arith.mulf %64, %66 : vector<8x8xf32>
    %68 = arith.truncf %67 : vector<8x8xf32> to vector<8x8xbf16>
    %c16_36 = arith.constant 16 : index
    %c0_37 = arith.constant 0 : index
    %69 = vector.load %arg11[%c16_36, %c0_37] : memref<32x32xbf16, #tpu.memory_space<vmem>>, vector<8x32xbf16>
    %cst_38 = arith.constant dense<0.000000e+00> : vector<8x32xf32>
    %70 = tpu.matmul %68, %69, %cst_38 {dimension_numbers = #tpu.dot_dimension_numbers<[1], [0], [0], [1], [0, 0, 1, 1], [], []>} : vector<8x8xbf16>, vector<8x32xbf16>, vector<8x32xf32> -> vector<8x32xf32>
    %71 = arith.addf %51, %70 : vector<8x32xf32>
    %72 = vector.extract_strided_slice %10 {offsets = [0, 24], sizes = [8, 8], strides = [1, 1]} : vector<8x32xbf16> to vector<8x8xbf16>
    %c0_39 = arith.constant 0 : index
    %c24 = arith.constant 24 : index
    %73 = vector.load %arg14[%c0_39, %c24] : memref<8x32xbf16, #tpu.memory_space<vmem>>, vector<8x8xbf16>
    %c0_40 = arith.constant 0 : index
    %c24_41 = arith.constant 24 : index
    %74 = vector.load %arg15[%c0_40, %c24_41] : memref<8x32xbf16, #tpu.memory_space<vmem>>, vector<8x8xbf16>
    %cst_42 = arith.constant dense<0.000000e+00> : vector<8x8xf32>
    %75 = tpu.matmul %72, %73, %cst_42 {dimension_numbers = #tpu.dot_dimension_numbers<[1], [1], [0], [0], [0, 0, 1, 0], [], []>} : vector<8x8xbf16>, vector<8x8xbf16>, vector<8x8xf32> -> vector<8x8xf32>
    %cst_43 = arith.constant dense<0xFF800000> : vector<8xf32>
    %76 = vector.multi_reduction <maximumf>, %75, %cst_43 [1] : vector<8x8xf32> to vector<8xf32>
    %77 = vector.shape_cast %76 : vector<8xf32> to vector<8x1xf32>
    %78 = vector.broadcast %77 : vector<8x1xf32> to vector<8x8xf32>
    %79 = arith.subf %75, %78 : vector<8x8xf32>
    %80 = math.exp %79 : vector<8x8xf32>
    %cst_44 = arith.constant dense<0.000000e+00> : vector<8xf32>
    %81 = vector.multi_reduction <add>, %80, %cst_44 [1] : vector<8x8xf32> to vector<8xf32>
    %82 = vector.shape_cast %81 : vector<8xf32> to vector<8x1xf32>
    %83 = arith.truncf %80 : vector<8x8xf32> to vector<8x8xbf16>
    %cst_45 = arith.constant dense<0.000000e+00> : vector<8x8xf32>
    %84 = tpu.matmul %83, %74, %cst_45 {dimension_numbers = #tpu.dot_dimension_numbers<[1], [0], [0], [1], [0, 0, 1, 1], [], []>} : vector<8x8xbf16>, vector<8x8xbf16>, vector<8x8xf32> -> vector<8x8xf32>
    %85 = tpu.reciprocal %82 {approx = true} : vector<8x1xf32> -> vector<8x1xf32>
    %86 = vector.broadcast %85 : vector<8x1xf32> to vector<8x8xf32>
    %87 = arith.mulf %84, %86 : vector<8x8xf32>
    %88 = arith.truncf %87 : vector<8x8xf32> to vector<8x8xbf16>
    %c24_46 = arith.constant 24 : index
    %c0_47 = arith.constant 0 : index
    %89 = vector.load %arg11[%c24_46, %c0_47] : memref<32x32xbf16, #tpu.memory_space<vmem>>, vector<8x32xbf16>
    %cst_48 = arith.constant dense<0.000000e+00> : vector<8x32xf32>
    %90 = tpu.matmul %88, %89, %cst_48 {dimension_numbers = #tpu.dot_dimension_numbers<[1], [0], [0], [1], [0, 0, 1, 1], [], []>} : vector<8x8xbf16>, vector<8x32xbf16>, vector<8x32xf32> -> vector<8x32xf32>
    %91 = arith.addf %71, %90 : vector<8x32xf32>
    %c0_49 = arith.constant 0 : index
    %c0_50 = arith.constant 0 : index
    %92 = vector.load %arg12[%c0_49, %c0_50] : memref<1x32xf32, #tpu.memory_space<vmem>>, vector<1x32xf32>
    %93 = vector.broadcast %92 : vector<1x32xf32> to vector<8x32xf32>
    %94 = arith.addf %91, %93 : vector<8x32xf32>
    %c0_51 = arith.constant 0 : index
    %c0_52 = arith.constant 0 : index
    %c0_53 = arith.constant 0 : index
    %95 = vector.load %arg13[%c0_51, %c0_52, %c0_53] : memref<1x8x32xf32, #tpu.memory_space<vmem>>, vector<1x8x32xf32>
    %96 = vector.shape_cast %95 : vector<1x8x32xf32> to vector<8x32xf32>
    %97 = vector.shape_cast %94 : vector<8x32xf32> to vector<1x8x32xf32>
    tpu.vector_store %arg13[%c0_51, %c0_52, %c0_53], %97 {strides = array<i32>} : memref<1x8x32xf32, #tpu.memory_space<vmem>>, vector<1x8x32xf32>,
    return
  }
  func.func @transform_0(%arg0: i32, %arg1: i32) -> (i32, i32, i32) {
    %c0_i32 = arith.constant 0 : i32
    %c0_i32_0 = arith.constant 0 : i32
    return %arg0, %arg1, %c0_i32 : i32, i32, i32
  }
  func.func @transform_1(%arg0: i32, %arg1: i32) -> (i32, i32, i32) {
    %c0_i32 = arith.constant 0 : i32
    %c0_i32_0 = arith.constant 0 : i32
    %c0_i32_1 = arith.constant 0 : i32
    return %arg0, %c0_i32, %c0_i32_0 : i32, i32, i32
  }
  func.func @transform_2(%arg0: i32, %arg1: i32) -> (i32, i32, i32) {
    %c0_i32 = arith.constant 0 : i32
    %c0_i32_0 = arith.constant 0 : i32
    %c0_i32_1 = arith.constant 0 : i32
    return %arg0, %c0_i32, %c0_i32_0 : i32, i32, i32
  }
  func.func @transform_3(%arg0: i32, %arg1: i32) -> (i32, i32) {
    %c0_i32 = arith.constant 0 : i32
    %c0_i32_0 = arith.constant 0 : i32
    %c0_i32_1 = arith.constant 0 : i32
    return %c0_i32, %c0_i32_0 : i32, i32
  }
  func.func @transform_4(%arg0: i32, %arg1: i32) -> (i32, i32) {
    %c0_i32 = arith.constant 0 : i32
    %c0_i32_0 = arith.constant 0 : i32
    %c0_i32_1 = arith.constant 0 : i32
    return %c0_i32, %c0_i32_0 : i32, i32
  }
  func.func @transform_5(%arg0: i32, %arg1: i32) -> (i32, i32) {
    %c0_i32 = arith.constant 0 : i32
    %c0_i32_0 = arith.constant 0 : i32
    %c0_i32_1 = arith.constant 0 : i32
    return %c0_i32, %c0_i32_0 : i32, i32
  }
  func.func @transform_6(%arg0: i32, %arg1: i32) -> (i32, i32) {
    %c0_i32 = arith.constant 0 : i32
    %c0_i32_0 = arith.constant 0 : i32
    %c0_i32_1 = arith.constant 0 : i32
    return %c0_i32, %c0_i32_0 : i32, i32
  }
  func.func @transform_7(%arg0: i32, %arg1: i32) -> (i32, i32) {
    %c0_i32 = arith.constant 0 : i32
    %c0_i32_0 = arith.constant 0 : i32
    %c0_i32_1 = arith.constant 0 : i32
    return %c0_i32, %c0_i32_0 : i32, i32
  }
  func.func @transform_8(%arg0: i32, %arg1: i32) -> (i32, i32) {
    %c0_i32 = arith.constant 0 : i32
    %c0_i32_0 = arith.constant 0 : i32
    %c0_i32_1 = arith.constant 0 : i32
    return %c0_i32, %c0_i32_0 : i32, i32
  }
  func.func @transform_9(%arg0: i32, %arg1: i32) -> (i32, i32) {
    %c0_i32 = arith.constant 0 : i32
    %c0_i32_0 = arith.constant 0 : i32
    %c0_i32_1 = arith.constant 0 : i32
    return %c0_i32, %c0_i32_0 : i32, i32
  }
  func.func @transform_10(%arg0: i32, %arg1: i32) -> (i32, i32) {
    %c0_i32 = arith.constant 0 : i32
    %c0_i32_0 = arith.constant 0 : i32
    %c0_i32_1 = arith.constant 0 : i32
    return %c0_i32, %c0_i32_0 : i32, i32
  }
  func.func @transform_11(%arg0: i32, %arg1: i32) -> (i32, i32, i32) {
    %c0_i32 = arith.constant 0 : i32
    %c0_i32_0 = arith.constant 0 : i32
    return %arg0, %arg1, %c0_i32 : i32, i32, i32
  }
}

</mosaic_0001>

<bundles_post_ra>
// kernel: tpu_custom_call.1
= control target key start
LH: loop header
LB: loop body
LE: loop exit
PB: predicated region body
PF: predicated region fallthrough
CT: control target
= control target key end

     0   :  { %s3122_s0 = inlined_call_operand.hbm [shape: bf16[2,8,32], index: 0, kind: input, shape index: {}]   ;;  %s3123_s1 = inlined_call_operand.hbm [shape: bf16[2,8,32], index: 1, kind: input, shape index: {}]   ;;  %s3124_s2 = inlined_call_operand.hbm [shape: bf16[2,8,32], index: 2, kind: input, shape index: {}]   ;;  %s3125_s3 = inlined_call_operand.hbm [shape: bf16[32,32], index: 3, kind: input, shape index: {}]   ;;  %s3126_s4 = inlined_call_operand.hbm [shape: f32[1,32], index: 4, kind: input, shape index: {}]   ;;  %s3127_s5 = inlined_call_operand.hbm [shape: bf16[32,32], index: 5, kind: input, shape index: {}]   ;;  %s3128_s6 = inlined_call_operand.hbm [shape: f32[1,32], index: 6, kind: input, shape index: {}]   ;;  %s3129_s7 = inlined_call_operand.hbm [shape: bf16[32,32], index: 7, kind: input, shape index: {}]   ;;  %s3130_s8 = inlined_call_operand.hbm [shape: f32[1,32], index: 8, kind: input, shape index: {}]   ;;  %s3131_s9 = inlined_call_operand.hbm [shape: bf16[32,32], index: 9, kind: input, shape index: {}]   ;;  %s3132_s10 = inlined_call_operand.hbm [shape: f32[1,32], index: 10, kind: input, shape index: {}]   ;;  %s3133_s11 = inlined_call_operand.hbm [shape: f32[2,8,32], index: 11, kind: output, shape index: {}]  }
   0x1   :  { %3155 = sst [smem:[#allocation36_spill]] %s3122_s0 }
   0x2   :  { %3156 = sst [smem:[#allocation37_spill]] %s3123_s1 }
   0x3   :  { %3157 = sst [smem:[#allocation38_spill]] %s3124_s2 }
   0x4   :  { %3158 = sst [smem:[#allocation39_spill]] %s3125_s3 }
   0x5   :  { %3159 = sst [smem:[#allocation40_spill]] %s3127_s5 }
   0x6   :  { %3160 = sst [smem:[#allocation41_spill]] %s3129_s7 }
   0x7   :  { %3161 = sst [smem:[#allocation42_spill]] %s3131_s9 }
   0x8   :  { %3162 = sst [smem:[#allocation43_spill]] %s3133_s11 }
   0x9   :  { %16 = vsyncpa [#allocation5], 0 }
   0xa   :  { %18 = vsyncpa [#allocation5 + $0x1], 0 }
   0xb   :  { %19 = vsyncpa [#allocation8], 0 }
   0xc   :  { %21 = vsyncpa [#allocation8 + $0x1], 0 }
   0xd   :  { %22 = vsyncpa [#allocation11], 0 }
   0xe   :  { %23 = vsyncpa [#allocation14], 0 }
   0xf   :  { %24 = vsyncpa [#allocation17], 0 }
  0x10   :  { %25 = vsyncpa [#allocation20], 0 }
  0x11   :  { %26 = vsyncpa [#allocation6], 0 }
  0x12   :  { %28 = vsyncpa [#allocation6 + $0x1], 0  ;;  %s2546_s17 = smov 0   ;;  %s2548_s18 = smov 0  }
  0x13   :  { %s2550_s19 = smov 0   ;;  %s2552_s20 = smov 0  }
  0x14   :  { %s2554_s21 = smov 0   ;;  %s2556_s22 = smov 0  }
  0x15 LB: > { %3163 = sst [smem:[#allocation30_spill]] %s2457_s20  ;;  %s2577_s23 = sadd.s32 4294967295, %s2465_s22   ;;  %s2465_s22 = sphi %s2556_s22, %s34_s22   ;;  %s2461_s21 = sphi %s2554_s21, %s3211_s21   ;;  %s2457_s20 = sphi %s2552_s20, %s3215_s20   ;;  %s2453_s19 = sphi %s2550_s19, %s3214_s19   ;;  %s2449_s18 = sphi %s2548_s18, %s3213_s18   ;;  %s2445_s17 = sphi %s2546_s17, %s3212_s17  }
  0x16   : > { %3164 = sst [smem:[#allocation31_spill]] %s2461_s21  ;;  %p1676_p0 = scmp.ge.s32.totalorder %s2465_s22, 1 }
  0x17   : > { %3165 = sst [smem:[#allocation32_spill]] %s2465_s22  ;;  %p3138_p1 = scmp.eq.s32.totalorder %s2577_s23, 0 }
  0x18   : > { %p327_p2 = scmp.lt.s32.totalorder %s2465_s22, 3  ;;  %s2467_s25 = smov [#allocation10]  }
  0x19   : > { %s339_s26 = sshll.u32 %s2467_s25, 4  ;;  %s2468_s28 = smov [#allocation13]   ;;  %s2586_s26 = int_to_ptr.vmem [resolvable:$true] %s339_s26 }
  0x1a   : > { %p2582_p3 = pnand %p1676_p0, %p327_p2  ;;  %s363_s29 = sshll.u32 %s2468_s28, 4  ;;  %s2597_s29 = int_to_ptr.vmem [resolvable:$true] %s363_s29 }
  0x1b   : > { %s2469_s30 = smov [#allocation16]   ;;  %s3169_s3 = sld [smem:[#allocation39_spill]] }
  0x1c   : > { %s3166_s24 = scalar_select %p2582_p3, 1, 0 }
  0x1d   : > { %p1905_p4 = pneg %p2582_p3  ;;  %s2599_s12 = sshll.u32 %s2469_s30, 4  ;;  %s388_s12 = int_to_ptr.vmem [resolvable:$true] %s2599_s12 }
  0x1e   : > { %3167 = sst [smem:[#allocation33_spill]] %s3166_s24 }
  0x1f   : > { %p2593_p6 = pnand %p1905_p4, %p3138_p1 }
  0x21   : > { %s3168_s27 = scalar_select %p2593_p6, 1, 0 }
  0x22   : > { %s2049_s15 = scalar_lea.hbm %s3169_s3, 256  ;;  %p2609_p8 = pneg %p2593_p6 }
  0x23   : > { %p2050_p7 = scmp.ne.s32.totalorder %s3169_s3, %s2049_s15  ;;  %p2056_p11 = scmp.lt.u32.totalorder %s2049_s15, %s3169_s3 }
  0x24   : > { %s3170_s11 = scalar_select %p2609_p8, 1, 0 }
  0x25   : > { %p2052_p9 = pnand %p2609_p8, %p2050_p7 }
  0x27   : > { %p2053_p10 = pneg %p2052_p9 }
  0x29   : > { %p2058_p12 = pnand %p2056_p11, %p2053_p10 }
  0x2b   : > { %2061 = shalt.err (!%p2058_p12)
}
  0x2c   : > { %s2062_s13 = scalar_lea.vmem %s2586_s26, 256  ;;  %p2070_p4 = scmp.lt.s32.totalorder %s2586_s26, %s2586_s26 }
  0x2d   : > { %p2063_p13 = scmp.ne.s32.totalorder %s2586_s26, %s2062_s13  ;;  %p2071_p5 = scmp.lt.s32.totalorder %s2062_s13, %s2062_s13 }
  0x2f   : > { %p2065_p0 = pnand %p2063_p13, %p2609_p8  ;;  %p2072_p7 = por %p2071_p5, %p2070_p4 }
  0x31   : > { %p2066_p2 = pneg %p2065_p0 }
  0x33   : > { %p2073_p9 = pnand %p2072_p7, %p2066_p2 }
  0x35   : > { %2076 = shalt.err (!%p2073_p9)
}
  0x36   : > { %s2470_s14 = smov 64   ;;  %s2471_s15 = smov 4  }
  0x37   : > { %1908 = dma.hbm_to_vmem [thread:$0]  (!%p2593_p6), %s3169_s3, 256, %s2586_s26, [#allocation11], %s2470_s14, %s2470_s14, %s2471_s15  }
  0x38   : > { %s3171_s5 = sld [smem:[#allocation40_spill]] }
  0x3e   : > { %s2077_s13 = scalar_lea.hbm %s3171_s5, 256 }
  0x3f   : > { %p2078_p5 = scmp.ne.s32.totalorder %s3171_s5, %s2077_s13  ;;  %p2084_p12 = scmp.lt.u32.totalorder %s2077_s13, %s3171_s5 }
  0x41   : > { %p2080_p10 = pnand %p2078_p5, %p2609_p8 }
  0x43   : > { %p2081_p11 = pneg %p2080_p10 }
  0x45   : > { %p2086_p13 = pnand %p2084_p12, %p2081_p11 }
  0x47   : > { %2089 = shalt.err (!%p2086_p13)
}
  0x48   : > { %s2090_s26 = scalar_lea.vmem %s2597_s29, 256  ;;  %p2098_p7 = scmp.lt.s32.totalorder %s2597_s29, %s2597_s29 }
  0x49   : > { %p2091_p0 = scmp.ne.s32.totalorder %s2597_s29, %s2090_s26  ;;  %p2099_p9 = scmp.lt.s32.totalorder %s2090_s26, %s2090_s26 }
  0x4b   : > { %p2093_p2 = pnand %p2091_p0, %p2609_p8  ;;  %p2100_p5 = por %p2099_p9, %p2098_p7 }
  0x4d   : > { %p2094_p4 = pneg %p2093_p2 }
  0x4f   : > { %p2101_p10 = pnand %p2100_p5, %p2094_p4 }
  0x51   : > { %2104 = shalt.err (!%p2101_p10)
}
  0x52   : > { %1914 = dma.hbm_to_vmem [thread:$0]  (!%p2593_p6), %s3171_s5, 256, %s2597_s29, [#allocation14], %s2470_s14, %s2470_s14, %s2471_s15  }
  0x53   : > { %s3172_s7 = sld [smem:[#allocation41_spill]] }
  0x59   : > { %s2105_s16 = scalar_lea.hbm %s3172_s7, 256 }
  0x5a   : > { %p2106_p11 = scmp.ne.s32.totalorder %s3172_s7, %s2105_s16  ;;  %p2112_p0 = scmp.lt.u32.totalorder %s2105_s16, %s3172_s7 }
  0x5c   : > { %p2108_p12 = pnand %p2106_p11, %p2609_p8 }
  0x5e   : > { %p2109_p13 = pneg %p2108_p12 }
  0x60   : > { %p2114_p2 = pnand %p2112_p0, %p2109_p13 }
  0x62   : > { %2117 = shalt.err (!%p2114_p2)
}
  0x63   : > { %s2118_s26 = scalar_lea.vmem %s388_s12, 256  ;;  %p2126_p5 = scmp.lt.s32.totalorder %s388_s12, %s388_s12 }
  0x64   : > { %p2119_p4 = scmp.ne.s32.totalorder %s388_s12, %s2118_s26  ;;  %p2127_p10 = scmp.lt.s32.totalorder %s2118_s26, %s2118_s26 }
  0x66   : > { %p2121_p7 = pnand %p2119_p4, %p2609_p8  ;;  %p2128_p1 = por %p2127_p10, %p2126_p5 }
  0x68   : > { %p2122_p9 = pneg %p2121_p7 }
  0x6a   : > { %p2129_p3 = pnand %p2128_p1, %p2122_p9 }
  0x6c   : > { %2132 = shalt.err (!%p2129_p3)
}
  0x6d   : > { %1920 = dma.hbm_to_vmem [thread:$0]  (!%p2593_p6), %s3172_s7, 256, %s388_s12, [#allocation17], %s2470_s14, %s2470_s14, %s2471_s15  }
  0x6e   : > { %s2472_s2 = smov [#allocation19]   ;;  %s3173_s9 = sld [smem:[#allocation42_spill]] }
  0x6f   : > { %s411_s20 = sshll.u32 %s2472_s2, 4  ;;  %s412_s20 = int_to_ptr.vmem [resolvable:$true] %s411_s20 }
  0x74   : > { %s2133_s25 = scalar_lea.hbm %s3173_s9, 256 }
  0x75   : > { %p2134_p1 = scmp.ne.s32.totalorder %s3173_s9, %s2133_s25  ;;  %p2140_p12 = scmp.lt.u32.totalorder %s2133_s25, %s3173_s9 }
  0x77   : > { %p2136_p3 = pnand %p2134_p1, %p2609_p8 }
  0x79   : > { %p2137_p11 = pneg %p2136_p3 }
  0x7b   : > { %p2142_p13 = pnand %p2140_p12, %p2137_p11 }
  0x7d   : > { %2145 = shalt.err (!%p2142_p13)
}
  0x7e   : > { %s2146_s12 = scalar_lea.vmem %s412_s20, 256  ;;  %p2154_p7 = scmp.lt.s32.totalorder %s412_s20, %s412_s20 }
  0x7f   : > { %p2147_p0 = scmp.ne.s32.totalorder %s412_s20, %s2146_s12  ;;  %p2155_p9 = scmp.lt.s32.totalorder %s2146_s12, %s2146_s12 }
  0x81   : > { %p2149_p2 = pnand %p2147_p0, %p2609_p8  ;;  %p2156_p5 = por %p2155_p9, %p2154_p7 }
  0x83   : > { %p2150_p4 = pneg %p2149_p2 }
  0x85   : > { %p2157_p10 = pnand %p2156_p5, %p2150_p4 }
  0x87   : > { %2160 = shalt.err (!%p2157_p10)
}
  0x88   : > { %1926 = dma.hbm_to_vmem [thread:$0]  (!%p2593_p6), %s3173_s9, 256, %s412_s20, [#allocation20], %s2470_s14, %s2470_s14, %s2471_s15  }
  0x89   : > { %s1675_s2 = sadd.s32 4294967294, %s2465_s22   ;;  %s46_s24 = sadd.s32 1, %s2461_s21 }
  0x8a   : > { %p48_p1 = scmp.ge.s32.totalorder %s46_s24, 2  ;;  %s55_s16 = sadd.s32 1, %s2453_s19 }
  0x8b   : > { %p62_p3 = scmp.ne.s32.totalorder %s2453_s19, %s2449_s18  ;;  %p63_p11 = scmp.eq.s32.totalorder %s2465_s22, 0 }
  0x8c   : > { %s3217_s24 = smov (%p48_p1, %s46_s24), 0  ;;  %p68_p13 = scmp.ne.s32.totalorder %s2449_s18, %s2445_s17 }
  0x8d   : > { %3174 = sst [smem:[#allocation34_spill]] %s3217_s24  ;;  %p2710_p12 = por %p63_p11, %p62_p3 }
  0x8e   : > { %s50_s14 = ssub.s32 %s2461_s21, %s3217_s24  ;;  %p314_p0 = scmp.eq.s32.totalorder %s2577_s23, 1 }
  0x8f   : > { %p53_p2 = scmp.eq.s32.totalorder %s50_s14, 0  ;;  %p3176_p4 = scmp.eq.s32.totalorder %s2577_s23, 0 }
  0x90   : > { %p2725_p9 = por %p314_p0, %p62_p3  ;;  %p320_p5 = scmp.eq.s32.totalorder %s1675_s2, 1 }
  0x91   : > { %p2721_p7 = por %p3176_p4, %p68_p13  ;;  %p1952_p1 = scmp.lt.s32.totalorder %s2465_s22, 2 }
  0x92   : > { %s3178_s20 = scalar_select %p2725_p9, 1, 0 }
  0x93   : > { %s3177_s15 = scalar_select %p2721_p7, 1, 0 }
  0x94   : > { %s2730_s28 = scalar_select %p53_p2, %s2453_s19, %s55_s16  }
  0x95   : > { %p2732_p10 = por %p320_p5, %p68_p13  ;;  %s3140_s13 = sand.u32 1, %s2453_s19  }
  0x96   : > { %3179 = sst [smem:[#allocation35_spill]] %s2730_s28  ;;  %s2739_s26 = sshll.u32 %s2461_s21, 6 }
  0x97   : > { %s3180_s30 = scalar_select %p2732_p10, 1, 0 }
  0x98   : > { %s2743_s12 = sshll.u32 %s3140_s13, 2  ;;  %p2747_p3 = pnand %p1952_p1, %p2710_p12 }
  0x99   : > { %s455_s0 = sand.u32 1, %s2465_s22   ;;  %s3182_s1 = sld [smem:[#allocation37_spill]] }
  0x9a   : > { %s3181_s29 = scalar_select %p2747_p3, 1, 0 }
  0x9b   : > { %s459_s3 = scalar_lea.vmem [#allocation7], %s2743_s12  ;;  %s2761_s25 = scalar_lea.sflag [#allocation8], %s455_s0 }
  0x9c   : > { %s466_s13 = sshll.u32 %s459_s3, 4  ;;  %p2767_p12 = pneg %p2747_p3  ;;  %s2759_s13 = int_to_ptr.vmem [resolvable:$true] %s466_s13 }
  0x9e   : > { %s3183_s7 = scalar_select %p2767_p12, 1, 0 }
  0x9f   : > { %s2756_s14 = scalar_lea.hbm %s3182_s1, %s2739_s26  ;;  %s2166_s9 = scalar_lea.hbm %s3182_s1, 128 }
  0xa0   : > { %s2161_s5 = scalar_lea.hbm %s2756_s14, 64  ;;  %p2167_p2 = scmp.lt.u32.totalorder %s2756_s14, %s3182_s1 }
  0xa1   : > { %p2162_p11 = scmp.ne.s32.totalorder %s2756_s14, %s2161_s5  ;;  %p2168_p4 = scmp.lt.u32.totalorder %s2166_s9, %s2161_s5 }
  0xa2   : > { %p2170_p1 = scmp.lt.u32.totalorder %s2161_s5, %s2756_s14 }
  0xa3   : > { %p2164_p13 = pnand %p2767_p12, %p2162_p11  ;;  %p2169_p5 = por %p2168_p4, %p2167_p2 }
  0xa5   : > { %p2165_p0 = pneg %p2164_p13  ;;  %p2171_p10 = por %p2170_p1, %p2169_p5 }
  0xa7   : > { %p2172_p9 = pnand %p2171_p10, %p2165_p0 }
  0xa9   : > { %2175 = shalt.err (!%p2172_p9)
}
  0xaa   : > { %s2176_s0 = scalar_lea.vmem %s2759_s13, 64  ;;  %s2473_s2 = smov [#allocation7]  }
  0xab   : > { %p2177_p11 = scmp.ne.s32.totalorder %s2759_s13, %s2176_s0  ;;  %s2181_s16 = sshll.u32 %s2473_s2, 4  ;;  %s2182_s16 = int_to_ptr.vmem [resolvable:$false] %s2181_s16 }
  0xac   : > { %s2183_s24 = scalar_lea.vmem %s2182_s16, 128  ;;  %p2184_p6 = scmp.lt.s32.totalorder %s2759_s13, %s2182_s16 }
  0xad   : > { %p2179_p13 = pnand %p2177_p11, %p2767_p12  ;;  %p2185_p8 = scmp.lt.s32.totalorder %s2183_s24, %s2176_s0 }
  0xaf   : > { %p2180_p7 = pneg %p2179_p13  ;;  %p2186_p2 = por %p2185_p8, %p2184_p6 }
  0xb1   : > { %p2187_p4 = pnand %p2186_p2, %p2180_p7 }
  0xb3   : > { %2190 = shalt.err (!%p2187_p4)
}
  0xb4   : > { %1936 = dma.hbm_to_vmem [thread:$0]  (!%p2747_p3), %s2756_s14, 64, %s2759_s13, %s2761_s25  }
  0xb5   : > { %s2474_s5 = smov [#allocation12]   ;;  %s2475_s3 = smov [#allocation15]  }
  0xb6   : > { %s353_s9 = sshll.u32 %s2474_s5, 4  ;;  %s377_s1 = sshll.u32 %s2475_s3, 4  ;;  %s354_s9 = int_to_ptr.vmem [resolvable:$true] %s353_s9  ;;  %s378_s1 = int_to_ptr.vmem [resolvable:$true] %s377_s1 }
  0xb7   : > { %s2191_s16 = scalar_lea.hbm %s3126_s4, 16  ;;  %p3184_p8 = scmp.ne.s32.totalorder %s3170_s11, 0 }
  0xb8   : > { %p2192_p6 = scmp.ne.s32.totalorder %s3126_s4, %s2191_s16  ;;  %p2198_p10 = scmp.lt.u32.totalorder %s2191_s16, %s3126_s4 }
  0xba   : > { %p2194_p7 = pnand %p2192_p6, %p3184_p8 }
  0xbc   : > { %p2195_p9 = pneg %p2194_p7 }
  0xbe   : > { %p2200_p0 = pnand %p2198_p10, %p2195_p9 }
  0xc0   : > { %2203 = shalt.err (!%p2200_p0)
}
  0xc1   : > { %s2204_s13 = scalar_lea.vmem %s354_s9, 16  ;;  %s2211_s21 = scalar_lea.vmem %s354_s9, 32 }
  0xc2   : > { %p2205_p5 = scmp.ne.s32.totalorder %s354_s9, %s2204_s13  ;;  %p2212_p13 = scmp.lt.s32.totalorder %s354_s9, %s354_s9 }
  0xc3   : > { %p2213_p2 = scmp.lt.s32.totalorder %s2211_s21, %s2204_s13 }
  0xc4   : > { %p2207_p1 = pnand %p2205_p5, %p3184_p8 }
  0xc5   : > { %p2214_p4 = por %p2213_p2, %p2212_p13 }
  0xc6   : > { %p2208_p11 = pneg %p2207_p1 }
  0xc8   : > { %p2215_p3 = pnand %p2214_p4, %p2208_p11 }
  0xca   : > { %2218 = shalt.err (!%p2215_p3)
}
  0xcb   : > { %p3185_p6 = scmp.ne.s32.totalorder %s3168_s27, 0  ;;  %s2219_s3 = scalar_lea.hbm %s3128_s6, 16 }
  0xcc   : > { %p2220_p7 = scmp.ne.s32.totalorder %s3128_s6, %s2219_s3  ;;  %p2226_p3 = scmp.lt.u32.totalorder %s2219_s3, %s3128_s6 }
  0xcd   : > { %1911 = dma.hbm_to_vmem [thread:$0]  (!%p3185_p6), %s3126_s4, 16, %s354_s9, [#allocation11]  }
  0xce   : > { %p2222_p9 = pnand %p2220_p7, %p3184_p8 }
  0xd0   : > { %p2223_p10 = pneg %p2222_p9 }
  0xd2   : > { %p2228_p0 = pnand %p2226_p3, %p2223_p10 }
  0xd4   : > { %2231 = shalt.err (!%p2228_p0)
}
  0xd5   : > { %s2232_s13 = scalar_lea.vmem %s378_s1, 16  ;;  %s2239_s9 = scalar_lea.vmem %s378_s1, 32 }
  0xd6   : > { %p2233_p5 = scmp.ne.s32.totalorder %s378_s1, %s2232_s13  ;;  %p2240_p13 = scmp.lt.s32.totalorder %s378_s1, %s378_s1 }
  0xd7   : > { %p2241_p2 = scmp.lt.s32.totalorder %s2239_s9, %s2232_s13 }
  0xd8   : > { %p2235_p1 = pnand %p2233_p5, %p3184_p8 }
  0xd9   : > { %p2242_p4 = por %p2241_p2, %p2240_p13 }
  0xda   : > { %p2236_p11 = pneg %p2235_p1 }
  0xdc   : > { %p2243_p12 = pnand %p2242_p4, %p2236_p11 }
  0xde   : > { %2246 = shalt.err (!%p2243_p12)
}
  0xdf   : > { %1917 = dma.hbm_to_vmem [thread:$0]  (!%p3185_p6), %s3128_s6, 16, %s378_s1, [#allocation14]  }
  0xe0   : > { %s2476_s5 = smov [#allocation18]   ;;  %s2477_s28 = smov [#allocation21]  }
  0xe1   : > { %s401_s22 = sshll.u32 %s2476_s5, 4  ;;  %s425_s3 = sshll.u32 %s2477_s28, 4  ;;  %s402_s22 = int_to_ptr.vmem [resolvable:$true] %s401_s22  ;;  %s426_s3 = int_to_ptr.vmem [resolvable:$true] %s425_s3 }
  0xe2   : > { %s2247_s0 = scalar_lea.hbm %s3130_s8, 16 }
  0xe3   : > { %p2248_p12 = scmp.ne.s32.totalorder %s3130_s8, %s2247_s0  ;;  %p2254_p10 = scmp.lt.u32.totalorder %s2247_s0, %s3130_s8 }
  0xe5   : > { %p2250_p7 = pnand %p2248_p12, %p3184_p8 }
  0xe7   : > { %p2251_p9 = pneg %p2250_p7 }
  0xe9   : > { %p2256_p3 = pnand %p2254_p10, %p2251_p9 }
  0xeb   : > { %2259 = shalt.err (!%p2256_p3)
}
  0xec   : > { %s2260_s1 = scalar_lea.vmem %s402_s22, 16  ;;  %s2267_s14 = scalar_lea.vmem %s402_s22, 32 }
  0xed   : > { %p2261_p0 = scmp.ne.s32.totalorder %s402_s22, %s2260_s1  ;;  %p2268_p11 = scmp.lt.s32.totalorder %s402_s22, %s402_s22 }
  0xee   : > { %p2269_p13 = scmp.lt.s32.totalorder %s2267_s14, %s2260_s1 }
  0xef   : > { %p2263_p5 = pnand %p2261_p0, %p3184_p8 }
  0xf0   : > { %p2270_p2 = por %p2269_p13, %p2268_p11 }
  0xf1   : > { %p2264_p1 = pneg %p2263_p5 }
  0xf3   : > { %p2271_p4 = pnand %p2270_p2, %p2264_p1 }
  0xf5   : > { %2274 = shalt.err (!%p2271_p4)
}
  0xf6   : > { %1923 = dma.hbm_to_vmem [thread:$0]  (!%p3185_p6), %s3130_s8, 16, %s402_s22, [#allocation17]  }
  0xf7   : > { %s2275_s0 = scalar_lea.hbm %s3132_s10, 16 }
  0xf8   : > { %p2276_p12 = scmp.ne.s32.totalorder %s3132_s10, %s2275_s0  ;;  %p2282_p10 = scmp.lt.u32.totalorder %s2275_s0, %s3132_s10 }
  0xfa   : > { %p2278_p7 = pnand %p2276_p12, %p3184_p8 }
  0xfc   : > { %p2279_p9 = pneg %p2278_p7 }
  0xfe   : > { %p2284_p3 = pnand %p2282_p10, %p2279_p9 }
 0x100   : > { %2287 = shalt.err (!%p2284_p3)
}
 0x101   : > { %s2288_s1 = scalar_lea.vmem %s426_s3, 16  ;;  %s2295_s22 = scalar_lea.vmem %s426_s3, 32 }
 0x102   : > { %p2289_p0 = scmp.ne.s32.totalorder %s426_s3, %s2288_s1  ;;  %p2296_p11 = scmp.lt.s32.totalorder %s426_s3, %s426_s3 }
 0x103   : > { %p2297_p13 = scmp.lt.s32.totalorder %s2295_s22, %s2288_s1 }
 0x104   : > { %p2291_p5 = pnand %p2289_p0, %p3184_p8 }
 0x105   : > { %p2298_p2 = por %p2297_p13, %p2296_p11 }
 0x106   : > { %p2292_p1 = pneg %p2291_p5 }
 0x108   : > { %p2299_p4 = pnand %p2298_p2, %p2292_p1 }
 0x10a   : > { %2302 = shalt.err (!%p2299_p4)
}
 0x10b   : > { %1929 = dma.hbm_to_vmem [thread:$0]  (!%p3185_p6), %s3132_s10, 16, %s426_s3, [#allocation20]  }
 0x10c   : > { %s3186_s2 = sld [smem:[#allocation36_spill]]  ;;  %s440_s0 = scalar_lea.vmem [#allocation4], %s2743_s12 }
 0x10d   : > { %s448_s27 = sshll.u32 %s440_s0, 4  ;;  %s3187_s9 = sld [smem:[#allocation38_spill]]  ;;  %s2870_s27 = int_to_ptr.vmem [resolvable:$true] %s448_s27 }
 0x10e   : > { %s3188_s1 = sand.u32 1, %s2453_s19   ;;  %p3189_p6 = scmp.ne.s32.totalorder %s3183_s7, 0 }
 0x10f   : > { %s437_s3 = scalar_lea.sflag [#allocation5], %s3188_s1 }
 0x112   : > { %s2867_s16 = scalar_lea.hbm %s3186_s2, %s2739_s26  ;;  %s2308_s11 = scalar_lea.hbm %s3186_s2, 128 }
 0x113   : > { %s2876_s21 = scalar_lea.hbm %s3187_s9, %s2739_s26  ;;  %s2303_s22 = scalar_lea.hbm %s2867_s16, 64 }
 0x114   : > { %p2304_p8 = scmp.ne.s32.totalorder %s2867_s16, %s2303_s22  ;;  %p2309_p9 = scmp.lt.u32.totalorder %s2867_s16, %s3186_s2 }
 0x115   : > { %p2310_p10 = scmp.lt.u32.totalorder %s2308_s11, %s2303_s22  ;;  %p2312_p0 = scmp.lt.u32.totalorder %s2303_s22, %s2867_s16 }
 0x116   : > { %p2306_p12 = pnand %p2304_p8, %p3189_p6 }
 0x117   : > { %p2311_p3 = por %p2310_p10, %p2309_p9 }
 0x118   : > { %p2307_p7 = pneg %p2306_p12 }
 0x119   : > { %p2313_p5 = por %p2312_p0, %p2311_p3 }
 0x11b   : > { %p2314_p1 = pnand %p2313_p5, %p2307_p7 }
 0x11d   : > { %2317 = shalt.err (!%p2314_p1)
}
 0x11e   : > { %s2318_s26 = scalar_lea.vmem %s2870_s27, 64  ;;  %s2478_s24 = smov [#allocation4]  }
 0x11f   : > { %p2319_p11 = scmp.ne.s32.totalorder %s2870_s27, %s2318_s26  ;;  %s2323_s13 = sshll.u32 %s2478_s24, 4  ;;  %s2324_s13 = int_to_ptr.vmem [resolvable:$false] %s2323_s13 }
 0x120   : > { %s2325_s1 = scalar_lea.vmem %s2324_s13, 128  ;;  %p2326_p4 = scmp.lt.s32.totalorder %s2870_s27, %s2324_s13 }
 0x121   : > { %p2321_p13 = pnand %p2319_p11, %p3189_p6  ;;  %p2327_p8 = scmp.lt.s32.totalorder %s2325_s1, %s2318_s26 }
 0x123   : > { %p2322_p2 = pneg %p2321_p13  ;;  %p2328_p12 = por %p2327_p8, %p2326_p4 }
 0x125   : > { %p2329_p9 = pnand %p2328_p12, %p2322_p2 }
 0x127   : > { %2332 = shalt.err (!%p2329_p9)
}
 0x128   : > { %p3190_p7 = scmp.ne.s32.totalorder %s3181_s29, 0  ;;  %s477_s22 = scalar_lea.vmem [#allocation9], %s2743_s12 }
 0x129   : > { %s484_s14 = sshll.u32 %s477_s22, 4  ;;  %s2333_s5 = scalar_lea.hbm %s2876_s21, 64  ;;  %s485_s14 = int_to_ptr.vmem [resolvable:$true] %s484_s14 }
 0x12a   : > { %1933 = dma.hbm_to_vmem [thread:$0]  (!%p3190_p7), %s2867_s16, 64, %s2870_s27, %s437_s3  }
 0x12b   : > { %p2334_p10 = scmp.ne.s32.totalorder %s2876_s21, %s2333_s5  ;;  %s2338_s0 = scalar_lea.hbm %s3187_s9, 128 }
 0x12c   : > { %p2339_p5 = scmp.lt.u32.totalorder %s2876_s21, %s3187_s9  ;;  %p2340_p1 = scmp.lt.u32.totalorder %s2338_s0, %s2333_s5 }
 0x12d   : > { %p2336_p3 = pnand %p2334_p10, %p3189_p6  ;;  %p2342_p13 = scmp.lt.u32.totalorder %s2333_s5, %s2876_s21 }
 0x12e   : > { %p2341_p11 = por %p2340_p1, %p2339_p5 }
 0x12f   : > { %p2337_p0 = pneg %p2336_p3 }
 0x130   : > { %p2343_p2 = por %p2342_p13, %p2341_p11 }
 0x132   : > { %p2344_p4 = pnand %p2343_p2, %p2337_p0 }
 0x134   : > { %2347 = shalt.err (!%p2344_p4)
}
 0x135   : > { %s2348_s12 = scalar_lea.vmem %s485_s14, 64  ;;  %s2479_s16 = smov [#allocation9]  }
 0x136   : > { %p2349_p8 = scmp.ne.s32.totalorder %s485_s14, %s2348_s12  ;;  %s2353_s27 = sshll.u32 %s2479_s16, 4  ;;  %s2354_s27 = int_to_ptr.vmem [resolvable:$false] %s2353_s27 }
 0x137   : > { %s2355_s3 = scalar_lea.vmem %s2354_s27, 128  ;;  %p2356_p10 = scmp.lt.s32.totalorder %s485_s14, %s2354_s27 }
 0x138   : > { %p2351_p12 = pnand %p2349_p8, %p3189_p6  ;;  %p2357_p3 = scmp.lt.s32.totalorder %s2355_s3, %s2348_s12 }
 0x13a   : > { %p2352_p9 = pneg %p2351_p12  ;;  %p2358_p7 = por %p2357_p3, %p2356_p10 }
 0x13c   : > { %p2359_p1 = pnand %p2358_p7, %p2352_p9 }
 0x13e   : > { %2362 = shalt.err (!%p2359_p1)
}
 0x13f   : > { %p3191_p5 = scmp.ne.s32.totalorder %s3181_s29, 0  ;;  %s3192_s13 = sld [smem:[#allocation33_spill]] }
 0x141   : > { %1939 = dma.hbm_to_vmem [thread:$0]  (!%p3191_p5), %s2876_s21, 64, %s485_s14, %s2761_s25  }
 0x145   : > { %p3193_p0 = scmp.ne.s32.totalorder %s3192_s13, 0 }
 0x146   : > { %s2923_s7 = sand.u32 (!%p3193_p0), 1, %s2449_s18   ;;  %p3194_p6 = scmp.ne.s32.totalorder (!%p3193_p0), %s3177_s15, 0 }
 0x147   : > { %493 = sbr.rel (%p3193_p0) target bundleno = 2504 (0x9c8), region = 64  ;;  %s2926_s1 = sshll.u32 (!%p3193_p0), %s2923_s7, 2 }
 0x148   : > { %s496_s22 = scalar_lea.sflag (!%p3193_p0), [#allocation5], %s2923_s7  ;;  %s499_s5 = scalar_lea.vmem (!%p3193_p0), [#allocation4], %s2926_s1 }
 0x14e   : > { %2416 = dma.done.wait (%p3194_p6), %s496_s22, 64  }
 0x14f   : > { %2418 = vsyncadd (%p3194_p6), %s496_s22, 4294967232  ;;  %s504_s29 = sand.u32 1, %s2577_s23   ;;  %s508_s21 = scalar_lea.vmem [#allocation7], %s2926_s1 }
 0x150   : > { %s505_s25 = scalar_lea.sflag [#allocation8], %s504_s29 }
 0x151   : > { %2420 = dma.done.wait (%p3194_p6), %s505_s25, 128  }
 0x152   : > { %2422 = vsyncadd (%p3194_p6), %s505_s25, 4294967168  ;;  %s517_s14 = scalar_lea.vmem [#allocation9], %s2926_s1  ;;  %p3195_p7 = scmp.eq.s32.totalorder %s2577_s23, 0 }
 0x154   : > { %2424 = dma.done.wait (%p3195_p7), [#allocation11], 272   ;;  %p3196_p11 = pmov %p3195_p7 }
 0x155   : > { %p3197_p13 = pmov %p3195_p7 }
 0x156   : > { %2426 = vsyncadd (%p3196_p11), [#allocation11], 4294967024 }
 0x157   : > { %2428 = dma.done.wait (%p3197_p13), [#allocation14], 272   ;;  %p3198_p2 = pmov %p3195_p7 }
 0x159   : > { %2430 = vsyncadd (%p3198_p2), [#allocation14], 4294967024  ;;  %p3199_p4 = pmov %p3198_p2 }
 0x15a   : > { %p3200_p8 = pmov %p3198_p2 }
 0x15b   : > { %2432 = dma.done.wait (%p3199_p4), [#allocation17], 272  }
 0x15c   : > { %2434 = vsyncadd (%p3200_p8), [#allocation17], 4294967024  ;;  %p3201_p12 = pmov %p3198_p2 }
 0x15d   : > { %p3202_p9 = pmov %p3198_p2 }
 0x15e   : > { %2436 = dma.done.wait (%p3201_p12), [#allocation20], 272  }
 0x15f   : > { %2438 = vsyncadd (%p3202_p9), [#allocation20], 4294967024  ;;  %v2480_v0 = vmov 0.0   ;;  %vm2481_vm0 = vmmov 0   ;;  %v2025_v1 = vld [vmem:[#allocation13] sm:$0xff]   ;;  %v2026_v2 = vld [vmem:[#allocation13 + $0x8] sm:$0xff]  }
 0x160   : > { %1769 = vmatprep.subr.bf16.mxu0 %v2480_v0  ;;  %1773 = vmatprep.mubr.msk.bf16.mxu0 %vm2481_vm0, %v2480_v0  ;;  %v2027_v3 = vld [vmem:[#allocation16] sm:$0xff]   ;;  %v2028_v4 = vld [vmem:[#allocation16 + $0x8] sm:$0xff]   ;;  %vm627_vm1 = vcmask 261120   ;;  %v671_v7 = vld [vmem:[%s517_s14] sm:$0xf]  ;;  %vm739_vm2 = vcmask 257024  }
 0x161   : > { %1777 = vmatprep.subr.bf16.mxu1 %v2480_v0  ;;  %1781 = vmatprep.mubr.msk.bf16.mxu1 %vm2481_vm0, %v2480_v0  ;;  %v603_v5 = vld [vmem:[%s508_s21] sm:$0xf]  ;;  %v2029_v6 = vld [vmem:[#allocation10] sm:$0xff]   ;;  %v2030_v8 = vld [vmem:[#allocation10 + $0x8] sm:$0xff]   ;;  %vm814_vm3 = vcmask 64512   ;;  %s2482_s23 = smov 120  }
 0x162   : > { %1770 = vmatpush3.bf16.msra.mxu0 %v2025_v1  ;;  %1778 = vmatpush3.bf16.msra.mxu1 %v2027_v3  ;;  %v743_v9 = vld [vmem:[%s499_s5] sm:$0xf]  ;;  %v1705_v10 = vld [vmem:[#allocation15] ss:$0 sm:$0xff]  ;;  %v1709_v14 = vld [vmem:[#allocation18] ss:$0 sm:$0xff] }
 0x163   : > { %1771 = vmatprep.subr.bf16.mxu0 %v2480_v0  ;;  %1779 = vmatprep.subr.bf16.mxu1 %v2480_v0  ;;  %v1713_v24 = vld [vmem:[#allocation12] ss:$0 sm:$0xff]  ;;  %s2483_s15 = smov 112   ;;  %vm874_vm4 = vcmask 1043456   ;;  %s2484_s11 = smov 104  }
 0x164   : > { %v921_v61 = vld [vmem:[#allocation19] sm:$0xf]  ;;  %v1040_v3 = vld [vmem:[#allocation19 + $0x4] sm:$0xf]  ;;  %s3203_s28 = sld [smem:[#allocation30_spill]]  ;;  %s1704_s0 = sshll.u32 %s2923_s7, 3 }
 0x165   : > { %s597_s24 = scalar_lea.vmem [#allocation22], %s1704_s0  ;;  %s3204_s3 = sld [smem:[#allocation43_spill]] }
 0x166   : > { %1772 = vmatpush3.bf16.msra.mxu0 %v2026_v2  ;;  %1780 = vmatpush3.bf16.msra.mxu1 %v2028_v4  ;;  %v1091_v2 = vsel %vm874_vm4, %v921_v61, 0  ;;  %v1045_v4 = vsel %vm874_vm4, %v1040_v3, 0  ;;  %s1475_s12 = sshll.u32 %s597_s24, 4  ;;  %s1461_s1 = scalar_lea.sflag [#allocation6], %s2923_s7  ;;  %s3074_s12 = int_to_ptr.vmem [resolvable:$true] %s1475_s12 }
 0x167   : > { %1785 = vmatprep.subr.bf16.mxu0 %v2480_v0  ;;  %1793 = vmatprep.subr.bf16.mxu1 %v2480_v0  ;;  %s2363_s22 = scalar_lea.vmem %s3074_s12, 128  ;;  %p3205_p3 = scmp.ne.s32.totalorder %s3178_s20, 0 }
 0x168   : > { %p2364_p10 = scmp.ne.s32.totalorder %s3074_s12, %s2363_s22  ;;  %s2485_s5 = smov [#allocation22]  }
 0x169   : > { %1774 = vmatmul.mubr.msk.bf16.vlgmr.msra.gmra.mrb[0].mxu0 %vm627_vm1, %v603_v5  ;;  %1782 = vmatmul.mubr.msk.bf16.vlgmr.msra.gmra.mrb[0].mxu1 %vm627_vm1, %v671_v7  ;;  %s2367_s29 = sshll.u32 %s2485_s5, 4  ;;  %s2368_s29 = int_to_ptr.vmem [resolvable:$false] %s2367_s29 }
 0x16a   : > { %1786 = vmatpush3.bf16.msra.mxu0 %v2029_v6  ;;  %1789 = vmatprep.mubr.msk.bf16.mxu0 %vm2481_vm0, %v2480_v0  ;;  %s1733_s26 = sshll.u32 %s3203_s28, 7  ;;  %p2365_p1 = pnand %p2364_p10, %p3205_p3 }
 0x16b   : > { %1787 = vmatprep.subr.bf16.mxu0 %v2480_v0  ;;  %1795 = vmatprep.mubr.msk.bf16.mxu1 %vm2481_vm0, %v2480_v0  ;;  %s3072_s13 = scalar_lea.hbm %s3204_s3, %s1733_s26  ;;  %s2369_s25 = scalar_lea.vmem %s2368_s29, 256 }
 0x16c   : > { %p2366_p5 = pneg %p2365_p1  ;;  %p2370_p0 = scmp.lt.s32.totalorder %s3074_s12, %s2368_s29 }
 0x16d   : > { %p2371_p6 = scmp.lt.s32.totalorder %s2369_s25, %s2363_s22 }
 0x16e   : > { %1788 = vmatpush3.bf16.msra.mxu0 %v2030_v8 }
 0x16f   : > { %1799 = vmatprep.subr.bf16.mxu0 %v2480_v0  ;;  %p2372_p7 = por %p2371_p6, %p2370_p0 }
 0x171   : > { %1790 = vmatmul.mubr.msk.bf16.vlgmr.msra.gmra.mrb[4].mxu0 %vm627_vm1, %v743_v9  ;;  %p2373_p11 = pnand %p2372_p7, %p2366_p5 }
 0x172   : > { %1801 = vmatprep.mubr.msk.bf16.mxu0 %vm2481_vm0, %v2480_v0 }
 0x23c   : > { %v665_v11 = vpop.f32.mrb[0].mxu0  ;;  %v732_v18 = vpop.f32.mrb[0].mxu1 }
 0x23d   : > { %v666_v12 = vadd.f32 %v1705_v10, %v665_v11  ;;  %v1775_v13 = vpop.f32.mrb[1].mxu0  ;;  %v733_v19 = vadd.f32 %v1709_v14, %v732_v18  ;;  %v1783_v20 = vpop.f32.mrb[1].mxu1 }
 0x23e   : > { %v668_v15 = vpop.f32.mrb[2].mxu0  ;;  %v735_v21 = vpop.f32.mrb[2].mxu1 }
 0x23f   : > { %v738_v16 = vpack.c.bf16 %v666_v12, %v666_v12  ;;  %v1776_v17 = vpop.f32.mrb[3].mxu0  ;;  %v741_v22 = vpack.c.bf16 %v733_v19, %v733_v19  ;;  %v1784_v23 = vpop.f32.mrb[3].mxu1 }
 0x241   : > { %740 = vst.msk [vmem:[#allocation2] sm:$0xf] %vm739_vm2, %v738_v16  ;;  %742 = vst.msk [vmem:[#allocation3] sm:$0xf] %vm739_vm2, %v741_v22 }
 0x244   : > { %v805_v25 = vpop.f32.mrb[4].mxu0 }
 0x245   : > { %v1791_v26 = vpop.f32.mrb[5].mxu0  ;;  %v806_v28 = vadd.f32 %v1713_v24, %v805_v25 }
 0x246   : > { %v808_v27 = vpop.f32.mrb[6].mxu0 }
 0x247   : > { %v1792_v29 = vpop.f32.mrb[7].mxu0  ;;  %v2983_v33 = vpack.c.bf16 %v806_v28, %v806_v28 }
 0x248   : > { %v812_v30 = vld [vmem:[#allocation2] sm:$0xf]  ;;  %v813_v34 = vld [vmem:[#allocation3] sm:$0xf] }
 0x249   : > { %v819_v31 = vsel %vm814_vm3, %v812_v30, 0  ;;  %v2981_v32 = vcombine.low %v812_v30, %v812_v30  ;;  %v2988_v35 = vcombine.low %v813_v34, %v813_v34  ;;  %v876_v36 = vsel %vm874_vm4, %v813_v34, 0 }
 0x24a   : > { %1794 = vmatpush3.bf16.xpose.msra.mxu1 %v819_v31  ;;  %1800 = vmatpush3.bf16.msra.mxu0 %v876_v36 }
 0x24b   : > { %928 = vrot.lane.b32.xlu0 %v2981_v32, %s2482_s23  ;;  %1805 = vmatprep.subr.bf16.mxu1 %v2480_v0 }
 0x24c   : > { %1811 = vmatprep.subr.bf16.mxu0 %v2480_v0 }
 0x24f   : > { %923 = vrot.lane.b32.xlu0 %v2983_v33, %s2482_s23 }
 0x251   : > { %1796 = vmatmul.mubr.msk.bf16.vlgmr.msra.gmra.mrb[4].mxu1 %vm814_vm3, %v2983_v33 }
 0x252   : > { %1807 = vmatprep.mubr.msk.bf16.mxu1 %vm2481_vm0, %v2480_v0 }
 0x253   : > { %989 = vrot.lane.b32.xlu0 %v2988_v35, %s2482_s23 }
 0x257   : > { %1135 = vrot.lane.b32.xlu0 %v2981_v32, %s2483_s15 }
 0x2bd   : > { %v929_v37 = vpop.permute.xlu0 %928 }
 0x2be   : > { %v934_v38 = vsel %vm814_vm3, %v929_v37, 0 }
 0x2bf   : > { %1806 = vmatpush3.bf16.xpose.msra.mxu1 %v934_v38 }
 0x2c0   : > { %1817 = vmatprep.subr.bf16.mxu1 %v2480_v0 }
 0x2c1   : > { %v924_v39 = vpop.permute.xlu0 %923 }
 0x2c5   : > { %v990_v54 = vpop.permute.xlu0 %989 }
 0x2c6   : > { %1808 = vmatmul.mubr.msk.bf16.vlgmr.msra.gmra.mrb[8].mxu1 %vm814_vm3, %v924_v39  ;;  %v995_v55 = vsel %vm874_vm4, %v990_v54, 0 }
 0x2c7   : > { %1819 = vmatprep.mubr.msk.bf16.mxu1 %vm2481_vm0, %v2480_v0  ;;  %1818 = vmatpush3.bf16.msra.mxu1 %v1045_v4 }
 0x2c8   : > { %1829 = vmatprep.subr.bf16.mxu1 %v2480_v0 }
 0x2c9   : > { %v1136_v5 = vpop.permute.xlu0 %1135 }
 0x2ca   : > { %v1141_v24 = vsel %vm814_vm3, %v1136_v5, 0 }
 0x324   : > { %v855_v40 = vpop.f32.mrb[4].mxu1 }
 0x325   : > { %v1797_v41 = vpop.f32.mrb[5].mxu1  ;;  %v861_v42 = vsel %vm814_vm3, %v855_v40, -inf }
 0x326   : > { %862 = vmax.xlane.f32.xlu1 %v861_v42  ;;  %v858_v43 = vpop.f32.mrb[6].mxu1 }
 0x327   : > { %v1798_v44 = vpop.f32.mrb[7].mxu1 }
 0x399   : > { %v970_v45 = vpop.f32.mrb[8].mxu1 }
 0x39a   : > { %v1809_v46 = vpop.f32.mrb[9].mxu1  ;;  %v976_v47 = vsel %vm814_vm3, %v970_v45, -inf }
 0x39b   : > { %977 = vmax.xlane.f32.xlu1 %v976_v47  ;;  %v973_v48 = vpop.f32.mrb[10].mxu1 }
 0x39c   : > { %v1810_v49 = vpop.f32.mrb[11].mxu1 }
 0x3b3   : > { %v863_v50 = vpop.xlane.xlu1 %862 }
 0x3b4   : > { %v864_v51 = vsub.f32 %v855_v40, %v863_v50  ;;  %v1244_v50 = vld [vmem:[#allocation19 + $0x8] sm:$0xf] }
 0x3b6   : > { %v865_v52 = vmul.f32 1.442695, %v864_v51  ;;  %v1249_v51 = vsel %vm874_vm4, %v1244_v50, 0 }
 0x3b8   : > { %2033 = vpow2.f32 %v865_v52 }
 0x3c2   : > { %v2034_v53 = vpop.eup %2033 }
 0x3c3   : > { %v867_v56 = vsel %vm814_vm3, %v2034_v53, 0.0  ;;  %v870_v57 = vpack.c.bf16 %v2034_v53, %v2034_v53 }
 0x3c4   : > { %868 = vadd.xlane.f32.xlu0 %v867_v56 }
 0x3c5   : > { %1802 = vmatmul.mubr.msk.bf16.vlgmr.msra.gmra.mrb[8].mxu0 %vm814_vm3, %v870_v57 }
 0x3c6   : > { %1812 = vmatpush3.bf16.msra.mxu0 %v995_v55  ;;  %1813 = vmatprep.mubr.msk.bf16.mxu0 %vm2481_vm0, %v2480_v0 }
 0x3c7   : > { %1823 = vmatprep.subr.bf16.mxu0 %v2480_v0 }
 0x3da   : > { %1193 = vrot.lane.b32.xlu0 %v2988_v35, %s2483_s15 }
 0x3de   : > { %1292 = vrot.lane.b32.xlu0 %v2983_v33, %s2484_s11 }
 0x428   : > { %v978_v58 = vpop.xlane.xlu1 %977 }
 0x429   : > { %v979_v59 = vsub.f32 %v970_v45, %v978_v58 }
 0x42b   : > { %v980_v60 = vmul.f32 1.442695, %v979_v59 }
 0x42d   : > { %2035 = vpow2.f32 %v980_v60 }
 0x437   : > { %v2036_v62 = vpop.eup %2035 }
 0x438   : > { %v982_v63 = vsel %vm814_vm3, %v2036_v62, 0.0  ;;  %v985_v1 = vpack.c.bf16 %v2036_v62, %v2036_v62 }
 0x439   : > { %983 = vadd.xlane.f32.xlu1 %v982_v63 }
 0x43a   : > { %1814 = vmatmul.mubr.msk.bf16.vlgmr.msra.gmra.mrb[12].mxu0 %vm814_vm3, %v985_v1 }
 0x43b   : > { %1824 = vmatpush3.bf16.msra.mxu0 %v1091_v2  ;;  %1825 = vmatprep.mubr.msk.bf16.mxu0 %vm2481_vm0, %v2480_v0 }
 0x43c   : > { %1835 = vmatprep.subr.bf16.mxu0 %v2480_v0 }
 0x44a   : > { %1133 = vrot.lane.b32.xlu1 %v2983_v33, %s2483_s15 }
 0x451   : > { %v869_v6 = vpop.xlane.xlu0 %868 }
 0x452   : > { %2037 = vrcp.f32 %v869_v6 }
 0x455   : > { %v1194_v11 = vpop.permute.xlu0 %1193 }
 0x456   : > { %v1199_v15 = vsel %vm874_vm4, %v1194_v11, 0 }
 0x45c   : > { %v2038_v7 = vpop.eup %2037 }
 0x498   : > { %v912_v8 = vpop.f32.mrb[8].mxu0 }
 0x499   : > { %v919_v9 = vmul.f32 %v2038_v7, %v912_v8  ;;  %v1803_v10 = vpop.f32.mrb[9].mxu0 }
 0x49a   : > { %v915_v12 = vpop.f32.mrb[10].mxu0 }
 0x49b   : > { %v920_v13 = vpack.c.bf16 %v919_v9, %v919_v9  ;;  %v1804_v14 = vpop.f32.mrb[11].mxu0  ;;  %v1403_v9 = vld [vmem:[#allocation19 + $0xc] sm:$0xf] }
 0x49d   : > { %1826 = vmatmul.mubr.msk.bf16.vlgmr.msra.gmra.mrb[16].mxu0 %vm814_vm3, %v920_v13 }
 0x49e   : > { %1836 = vmatpush3.bf16.msra.mxu0 %v1199_v15  ;;  %1837 = vmatprep.mubr.msk.bf16.mxu0 %vm2481_vm0, %v2480_v0 }
 0x49f   : > { %1847 = vmatprep.subr.bf16.mxu0 %v2480_v0 }
 0x4c6   : > { %v984_v16 = vpop.xlane.xlu1 %983 }
 0x4c7   : > { %2039 = vrcp.f32 %v984_v16 }
 0x4ca   : > { %v1134_v25 = vpop.permute.xlu1 %1133 }
 0x4d1   : > { %v2040_v17 = vpop.eup %2039 }
 0x50d   : > { %v1031_v18 = vpop.f32.mrb[12].mxu0 }
 0x50e   : > { %v1038_v19 = vmul.f32 %v2040_v17, %v1031_v18  ;;  %v1815_v20 = vpop.f32.mrb[13].mxu0 }
 0x50f   : > { %v1034_v21 = vpop.f32.mrb[14].mxu0 }
 0x510   : > { %v1039_v22 = vpack.c.bf16 %v1038_v19, %v1038_v19  ;;  %v1816_v23 = vpop.f32.mrb[15].mxu0 }
 0x512   : > { %1820 = vmatmul.mubr.msk.bf16.vlgmr.msra.gmra.mrb[12].mxu1 %vm814_vm3, %v1039_v22 }
 0x513   : > { %1830 = vmatpush3.bf16.xpose.msra.mxu1 %v1141_v24  ;;  %1831 = vmatprep.mubr.msk.bf16.mxu1 %vm2481_vm0, %v2480_v0  ;;  %v1731_v24 = vld [vmem:[#allocation21] ss:$0 sm:$0xff] }
 0x514   : > { %1841 = vmatprep.subr.bf16.mxu1 %v2480_v0 }
 0x51a   : > { %1832 = vmatmul.mubr.msk.bf16.vlgmr.msra.gmra.mrb[16].mxu1 %vm814_vm3, %v1134_v25 }
 0x51b   : > { %1843 = vmatprep.mubr.msk.bf16.mxu1 %vm2481_vm0, %v2480_v0  ;;  %1842 = vmatpush3.bf16.msra.mxu1 %v1249_v51 }
 0x51c   : > { %1853 = vmatprep.subr.bf16.mxu1 %v2480_v0 }
 0x570   : > { %v1127_v26 = vpop.f32.mrb[16].mxu0 }
 0x571   : > { %v1827_v27 = vpop.f32.mrb[17].mxu0 }
 0x572   : > { %v1130_v28 = vpop.f32.mrb[18].mxu0 }
 0x573   : > { %v1828_v29 = vpop.f32.mrb[19].mxu0 }
 0x5e5   : > { %v1081_v30 = vpop.f32.mrb[12].mxu1 }
 0x5e6   : > { %v3039_v31 = vadd.f32 %v1127_v26, %v1081_v30  ;;  %v1821_v33 = vpop.f32.mrb[13].mxu1 }
 0x5e7   : > { %v1084_v34 = vpop.f32.mrb[14].mxu1 }
 0x5e8   : > { %v1822_v36 = vpop.f32.mrb[15].mxu1 }
 0x5ed   : > { %v1177_v37 = vpop.f32.mrb[16].mxu1 }
 0x5ee   : > { %v1833_v38 = vpop.f32.mrb[17].mxu1  ;;  %v1183_v39 = vsel %vm814_vm3, %v1177_v37, -inf }
 0x5ef   : > { %1184 = vmax.xlane.f32.xlu1 %v1183_v39  ;;  %v1180_v40 = vpop.f32.mrb[18].mxu1 }
 0x5f0   : > { %v1834_v41 = vpop.f32.mrb[19].mxu1 }
 0x600   : > { %1294 = vrot.lane.b32.xlu1 %v2981_v32, %s2484_s11  ;;  %v1293_v32 = vpop.permute.xlu0 %1292 }
 0x67c   : > { %v1185_v42 = vpop.xlane.xlu1 %1184 }
 0x67d   : > { %v1186_v43 = vsub.f32 %v1177_v37, %v1185_v42 }
 0x67f   : > { %v1187_v44 = vmul.f32 1.442695, %v1186_v43 }
 0x680   : > { %v1295_v46 = vpop.permute.xlu1 %1294 }
 0x681   : > { %2041 = vpow2.f32 %v1187_v44  ;;  %v1300_v49 = vsel %vm814_vm3, %v1295_v46, 0 }
 0x68b   : > { %v2042_v45 = vpop.eup %2041 }
 0x68c   : > { %v1189_v47 = vsel %vm814_vm3, %v2042_v45, 0.0  ;;  %v1192_v48 = vpack.c.bf16 %v2042_v45, %v2042_v45 }
 0x68d   : > { %1190 = vadd.xlane.f32.xlu0 %v1189_v47 }
 0x68e   : > { %1838 = vmatmul.mubr.msk.bf16.vlgmr.msra.gmra.mrb[20].mxu0 %vm814_vm3, %v1192_v48 }
 0x68f   : > { %1848 = vmatpush3.bf16.xpose.msra.mxu0 %v1300_v49  ;;  %1849 = vmatprep.mubr.msk.bf16.mxu0 %vm2481_vm0, %v2480_v0 }
 0x690   : > { %1859 = vmatprep.subr.bf16.mxu0 %v2480_v0 }
 0x696   : > { %1850 = vmatmul.mubr.msk.bf16.vlgmr.msra.gmra.mrb[24].mxu0 %vm814_vm3, %v1293_v32 }
 0x697   : > { %1861 = vmatprep.mubr.msk.bf16.mxu0 %vm2481_vm0, %v2480_v0 }
 0x6a3   : > { %1352 = vrot.lane.b32.xlu0 %v2988_v35, %s2484_s11 }
 0x71a   : > { %v1191_v52 = vpop.xlane.xlu0 %1190 }
 0x71b   : > { %2043 = vrcp.f32 %v1191_v52 }
 0x71e   : > { %v1353_v57 = vpop.permute.xlu0 %1352 }
 0x71f   : > { %v1358_v61 = vsel %vm874_vm4, %v1353_v57, 0 }
 0x725   : > { %v2044_v53 = vpop.eup %2043 }
 0x761   : > { %v1235_v54 = vpop.f32.mrb[20].mxu0 }
 0x762   : > { %v1242_v55 = vmul.f32 %v2044_v53, %v1235_v54  ;;  %v1839_v56 = vpop.f32.mrb[21].mxu0 }
 0x763   : > { %v1238_v58 = vpop.f32.mrb[22].mxu0 }
 0x764   : > { %v1243_v59 = vpack.c.bf16 %v1242_v55, %v1242_v55  ;;  %v1840_v60 = vpop.f32.mrb[23].mxu0 }
 0x766   : > { %1844 = vmatmul.mubr.msk.bf16.vlgmr.msra.gmra.mrb[20].mxu1 %vm814_vm3, %v1243_v59 }
 0x767   : > { %1854 = vmatpush3.bf16.msra.mxu1 %v1358_v61  ;;  %1855 = vmatprep.mubr.msk.bf16.mxu1 %vm2481_vm0, %v2480_v0  ;;  %v1408_v0 = vsel %vm874_vm4, %v1403_v9, 0 }
 0x768   : > { %1860 = vmatpush3.bf16.msra.mxu0 %v1408_v0 }
 0x769   : > { %v1336_v35 = vpop.f32.mrb[24].mxu0 }
 0x76a   : > { %v1851_v62 = vpop.f32.mrb[25].mxu0  ;;  %v1342_v63 = vsel %vm814_vm3, %v1336_v35, -inf }
 0x76b   : > { %1343 = vmax.xlane.f32.xlu1 %v1342_v63  ;;  %v1339_v1 = vpop.f32.mrb[26].mxu0 }
 0x76c   : > { %v1852_v2 = vpop.f32.mrb[27].mxu0 }
 0x7f8   : > { %v1344_v3 = vpop.xlane.xlu1 %1343 }
 0x7f9   : > { %v1345_v4 = vsub.f32 %v1336_v35, %v1344_v3 }
 0x7fb   : > { %v1346_v5 = vmul.f32 1.442695, %v1345_v4 }
 0x7fd   : > { %2045 = vpow2.f32 %v1346_v5 }
 0x807   : > { %v2046_v6 = vpop.eup %2045 }
 0x808   : > { %v1348_v7 = vsel %vm814_vm3, %v2046_v6, 0.0  ;;  %v1351_v8 = vpack.c.bf16 %v2046_v6, %v2046_v6 }
 0x809   : > { %1349 = vadd.xlane.f32.xlu1 %v1348_v7 }
 0x80a   : > { %1856 = vmatmul.mubr.msk.bf16.vlgmr.msra.gmra.mrb[24].mxu1 %vm814_vm3, %v1351_v8 }
 0x839   : > { %v1285_v10 = vpop.f32.mrb[20].mxu1 }
 0x83a   : > { %v1291_v11 = vadd.f32 %v1285_v10, %v3039_v31  ;;  %v1845_v12 = vpop.f32.mrb[21].mxu1 }
 0x83b   : > { %v1288_v13 = vpop.f32.mrb[22].mxu1 }
 0x83c   : > { %v1846_v14 = vpop.f32.mrb[23].mxu1 }
 0x896   : > { %v1350_v15 = vpop.xlane.xlu1 %1349 }
 0x897   : > { %2047 = vrcp.f32 %v1350_v15 }
 0x8a1   : > { %v2048_v16 = vpop.eup %2047 }
 0x8dd   : > { %v1394_v17 = vpop.f32.mrb[24].mxu1 }
 0x8de   : > { %v1401_v18 = vmul.f32 %v2048_v16, %v1394_v17  ;;  %v1857_v19 = vpop.f32.mrb[25].mxu1 }
 0x8df   : > { %v1397_v20 = vpop.f32.mrb[26].mxu1 }
 0x8e0   : > { %v1402_v21 = vpack.c.bf16 %v1401_v18, %v1401_v18  ;;  %v1858_v22 = vpop.f32.mrb[27].mxu1 }
 0x8e2   : > { %1862 = vmatmul.mubr.msk.bf16.vlgmr.msra.gmra.mrb[28].mxu0 %vm814_vm3, %v1402_v21 }
 0x9b5   : > { %v1444_v23 = vpop.f32.mrb[28].mxu0 }
 0x9b6   : > { %v1450_v25 = vadd.f32 %v1444_v23, %v1291_v11  ;;  %v1863_v26 = vpop.f32.mrb[29].mxu0 }
 0x9b7   : > { %v1447_v27 = vpop.f32.mrb[30].mxu0 }
 0x9b8   : > { %v1458_v28 = vadd.f32 %v1731_v24, %v1450_v25  ;;  %v1864_v29 = vpop.f32.mrb[31].mxu0 }
 0x9ba   : > { %1459 = vst.msk [vmem:[%s597_s24] sm:$0xff] %vm627_vm1, %v1458_v28 }
 0x9bb   : > { %2376 = shalt.err (!%p2373_p11)
}
 0x9bc   : > { %s2377_s7 = scalar_lea.hbm %s3072_s13, 128  ;;  %s2381_s23 = scalar_lea.hbm %s3204_s3, 256 }
 0x9bd   : > { %p2378_p13 = scmp.ne.s32.totalorder %s3072_s13, %s2377_s7  ;;  %p2382_p8 = scmp.lt.u32.totalorder %s3072_s13, %s3204_s3 }
 0x9be   : > { %p2383_p12 = scmp.lt.u32.totalorder %s2381_s23, %s2377_s7  ;;  %p2385_p10 = scmp.lt.u32.totalorder %s2377_s7, %s3072_s13 }
 0x9bf   : > { %p2379_p2 = pnand %p2378_p13, %p3205_p3 }
 0x9c0   : > { %p2384_p9 = por %p2383_p12, %p2382_p8 }
 0x9c1   : > { %p2380_p4 = pneg %p2379_p2 }
 0x9c2   : > { %p2386_p1 = por %p2385_p10, %p2384_p9 }
 0x9c4   : > { %p2387_p5 = pnand %p2386_p1, %p2380_p4 }
 0x9c6   : > { %2390 = shalt.err (!%p2387_p5)
}
 0x9c7   : > { %1903 = dma.vmem_to_hbm [thread:$0]  (%p3205_p3), %s3074_s12, 128, %s3072_s13, %s1461_s1  }
 0x9c8 PF: > { %s3206_s28 = sld [smem:[#allocation32_spill]]  ;;  %s1487_s0 = sand.u32 1, %s2445_s17  }
 0x9c9   : > { %p3207_p0 = scmp.ne.s32.totalorder %s3180_s30, 0  ;;  %s1488_s26 = scalar_lea.sflag [#allocation6], %s1487_s0 }
 0x9ce   : > { %p3208_p6 = scmp.ge.s32.totalorder %s3206_s28, 2 }
 0x9d0   : > { %p1941_p7 = pnand %p3208_p6, %p3207_p0 }
 0x9d2   : > { %2440 = dma.done.wait (!%p1941_p7), %s1488_s26, 128  }
 0x9d3   : > { %2442 = vsyncadd (!%p1941_p7), %s1488_s26, 4294967168  ;;  %s34_s22 = sadd.s32 1, %s3206_s28   ;;  %s3209_s20 = sld [smem:[#allocation35_spill]] }
 0x9d4   : > { %p31_p11 = scmp.ge.s32.totalorder %s34_s22, 4   ;;  %s3210_s24 = sld [smem:[#allocation31_spill]] }
 0x9d5   : > { %s3211_s21 = sld [smem:[#allocation34_spill]]  ;;  %s3212_s17 = smov %s2449_s18 }
 0x9d6   : > { %s3213_s18 = smov %s2453_s19  ;;  %33 = sbr.rel (!%p31_p11) target bundleno = 21 (0x15), region = 169 }
 0x9d9   : > { %s3214_s19 = smov %s3209_s20 }
 0x9da   : > { %s3215_s20 = smov %s3210_s24 }
 0x9dd   :  { %1493 = vsyncpa [#allocation5], 1 }
 0x9de   :  { %1495 = vsyncpa [#allocation5 + $0x1], 1 }
 0x9df   :  { %1496 = vsyncpa [#allocation8], 1 }
 0x9e0   :  { %1498 = vsyncpa [#allocation8 + $0x1], 1 }
 0x9e1   :  { %1499 = vsyncpa [#allocation11], 1 }
 0x9e2   :  { %1500 = vsyncpa [#allocation14], 1 }
 0x9e3   :  { %1501 = vsyncpa [#allocation17], 1 }
 0x9e4   :  { %1502 = vsyncpa [#allocation20], 1 }
 0x9e5   :  { %1503 = vsyncpa [#allocation6], 1 }
 0x9e6   :  { %1505 = vsyncpa [#allocation6 + $0x1], 1 }

</bundles_post_ra>
